<compile_context>
chip_gen: v7x
topology: tpu7x:2x2x1
jax: 0.10.0
libtpu: 0.0.40
codegen_flags: <defaults>
</compile_context>

<pallas_src>
import jax
import jax.numpy as jnp
from jax import lax
from jax.experimental import pallas as pl
from jax.experimental.pallas import tpu as pltpu


# ----------------------------- Pallas kernel -------------------------------

def lstm_recurrence_kernel(pre_gates_ref, w_hh_ref, h_ref, c_ref):
    """Single-invocation LSTM recurrence.

    pre_gates_ref: (T, B, 4H) = x @ W_ih^T + (b_ih + b_hh)  (precomputed in XLA)
    w_hh_ref:      (H, 4H)    = W_hh^T
    h_ref, c_ref:  (B, H)     final hidden / cell state outputs
    """
    T = pre_gates_ref.shape[0]
    B = h_ref.shape[0]
    H = w_hh_ref.shape[0]

    w_hh = w_hh_ref[...]  # resident for the whole recurrence

    def step(t, carry):
        h, c = carry
        gates = pre_gates_ref[t] + jnp.dot(
            h, w_hh, preferred_element_type=jnp.float32)        # (B, 4H)
        i_g = jax.nn.sigmoid(gates[:, 0:H])
        f_g = jax.nn.sigmoid(gates[:, H:2 * H])
        g_g = jnp.tanh(gates[:, 2 * H:3 * H])
        o_g = jax.nn.sigmoid(gates[:, 3 * H:4 * H])
        c_new = f_g * c + i_g * g_g
        h_new = o_g * jnp.tanh(c_new)
        return (h_new, c_new)

    h0 = jnp.zeros((B, H), jnp.float32)
    c0 = jnp.zeros((B, H), jnp.float32)
    h_T, c_T = lax.fori_loop(0, T, step, (h0, c0), unroll=True)

    h_ref[...] = h_T
    c_ref[...] = c_T


# ------------------------------- Wrapper ------------------------------------

def rnn_text_classifier_forward(tokens, params):
    """Forward pass matching RNNTextClassifier.forward (init_state=None).

    tokens: int32 (B, T)
    returns: (logits (B, n_out), (h_n (1, B, H), c_n (1, B, H)))
    """
    # Embedding lookup (gather): glue in plain JAX.
    x_emb = jnp.take(params["embedding"], tokens, axis=0)       # (B, T, E) f32
    B, T, E = x_emb.shape
    H = params["w_hh"].shape[1]                                 # w_hh: (4H, H)

    # Pad batch to a sublane-friendly multiple of 8 (padded rows discarded later).
    B_pad = max(8, ((B + 7) // 8) * 8)
    if B_pad != B:
        x_emb = jnp.pad(x_emb, ((0, B_pad - B), (0, 0), (0, 0)))

    # Time-major for the sequential recurrence.
    x_tbe = jnp.transpose(x_emb, (1, 0, 2))                     # (T, B_pad, E)

    # Hoist the time-invariant input projection out of the serial loop:
    # one (T*B_pad, E) @ (E, 4H) matmul done by XLA.
    w_ih_t = params["w_ih"].T                                   # (E, 4H)
    w_hh_t = params["w_hh"].T                                   # (H, 4H)
    bias = params["b_ih"] + params["b_hh"]                      # (4H,)
    pre_gates = (x_tbe.reshape(T * B_pad, E) @ w_ih_t + bias)
    pre_gates = pre_gates.reshape(T, B_pad, 4 * H).astype(jnp.float32)

    grid_spec = pltpu.PrefetchScalarGridSpec(
        num_scalar_prefetch=0,
        grid=(1,),
        in_specs=[
            pl.BlockSpec((T, B_pad, 4 * H), lambda i: (0, 0, 0)),  # pre-gates slab
            pl.BlockSpec((H, 4 * H), lambda i: (0, 0)),            # W_hh^T
        ],
        out_specs=[
            pl.BlockSpec((B_pad, H), lambda i: (0, 0)),            # h_T
            pl.BlockSpec((B_pad, H), lambda i: (0, 0)),            # c_T
        ],
    )

    h_T_pad, c_T_pad = pl.pallas_call(
        lstm_recurrence_kernel,
        grid_spec=grid_spec,
        out_shape=(
            jax.ShapeDtypeStruct((B_pad, H), jnp.float32),
            jax.ShapeDtypeStruct((B_pad, H), jnp.float32),
        ),
        compiler_params=pltpu.CompilerParams(
            dimension_semantics=("arbitrary",)),
    )(pre_gates, w_hh_t)

    h_T = h_T_pad[:B]
    c_T = c_T_pad[:B]

    # Tiny final FC on the last hidden state: (B,128)@(128,2) in XLA,
    # avoiding a 2-lane-wide masked store inside the kernel.
    logits = h_T @ params["w_fc"].T + params["b_fc"]

    # PyTorch LSTM final state shape: (n_layer=1, B, H)
    return logits, (h_T[None], c_T[None])


# ----------------------- Pure-JAX reference (for check) ---------------------

def reference_forward(tokens, params):
    x_emb = jnp.take(params["embedding"], tokens, axis=0)       # (B, T, E)
    B, T, E = x_emb.shape
    H = params["w_hh"].shape[1]
    w_ih_t, w_hh_t = params["w_ih"].T, params["w_hh"].T
    bias = params["b_ih"] + params["b_hh"]

    def step(carry, x_t):
        h, c = carry
        gates = x_t @ w_ih_t + h @ w_hh_t + bias
        i = jax.nn.sigmoid(gates[:, 0:H])
        f = jax.nn.sigmoid(gates[:, H:2 * H])
        g = jnp.tanh(gates[:, 2 * H:3 * H])
        o = jax.nn.sigmoid(gates[:, 3 * H:4 * H])
        c = f * c + i * g
        h = o * jnp.tanh(c)
        return (h, c), None

    h0 = jnp.zeros((B, H), jnp.float32)
    c0 = jnp.zeros((B, H), jnp.float32)
    (h_T, c_T), _ = lax.scan(step, (h0, c0), jnp.transpose(x_emb, (1, 0, 2)))
    logits = h_T @ params["w_fc"].T + params["b_fc"]
    return logits, (h_T[None], c_T[None])


# --------------------------------- Main --------------------------------------

if __name__ == "__main__":
    # Module hyper-parameters (small shapes consistent with the PyTorch module).
    vocab_size = 50
    embedding_dim = 128   # module default
    cell_size = 128       # module default
    n_out = 2
    B, T = 2, 8

    key = jax.random.PRNGKey(0)
    keys = jax.random.split(key, 8)

    # Deterministic synthetic parameters (PyTorch-like uniform init scale).
    s = 1.0 / (cell_size ** 0.5)
    params = {
        "embedding": jax.random.normal(keys[0], (vocab_size, embedding_dim), jnp.float32),
        "w_ih": jax.random.uniform(keys[1], (4 * cell_size, embedding_dim), jnp.float32, -s, s),
        "w_hh": jax.random.uniform(keys[2], (4 * cell_size, cell_size), jnp.float32, -s, s),
        "b_ih": jax.random.uniform(keys[3], (4 * cell_size,), jnp.float32, -s, s),
        "b_hh": jax.random.uniform(keys[4], (4 * cell_size,), jnp.float32, -s, s),
        "w_fc": jax.random.uniform(keys[5], (n_out, cell_size), jnp.float32, -s, s),
        "b_fc": jax.random.uniform(keys[6], (n_out,), jnp.float32, -s, s),
    }

    tokens = jax.random.randint(keys[7], (B, T), 0, vocab_size, dtype=jnp.int32)

    logits, (h_n, c_n) = rnn_text_classifier_forward(tokens, params)
    jax.block_until_ready((logits, h_n, c_n))

    # Correctness check against a pure-JAX reference.
    ref_logits, (ref_h, ref_c) = reference_forward(tokens, params)
    assert jnp.allclose(logits, ref_logits, atol=1e-4, rtol=1e-4)
    assert jnp.allclose(h_n, ref_h, atol=1e-4, rtol=1e-4)
    assert jnp.allclose(c_n, ref_c, atol=1e-4, rtol=1e-4)

    print("KERNEL_OK")
</pallas_src>

<mosaic_0001>
module attributes {stable_mosaic.version = 11 : i64} {
  func.func @lstm_recurrence_kernel(%arg0: i32, %arg1: memref<8x8x512xf32, #tpu.memory_space<vmem>>, %arg2: memref<128x512xf32, #tpu.memory_space<vmem>>, %arg3: memref<8x128xf32, #tpu.memory_space<vmem>>, %arg4: memref<8x128xf32, #tpu.memory_space<vmem>>) attributes {dimension_semantics = [#tpu.dimension_semantics<arbitrary>], iteration_bounds = array<i64: 1>, scalar_prefetch = 0 : i64, scratch_operands = 0 : i64, tpu.core_type = #tpu.core_type<tc>, window_params = [{pipeline_mode = #tpu.pipeline_mode<synchronous>, transform_indices = @transform_0, window_bounds = array<i64: 8, 8, 512>}, {pipeline_mode = #tpu.pipeline_mode<synchronous>, transform_indices = @transform_1, window_bounds = array<i64: 128, 512>}, {pipeline_mode = #tpu.pipeline_mode<synchronous>, transform_indices = @transform_2, window_bounds = array<i64: 8, 128>}, {pipeline_mode = #tpu.pipeline_mode<synchronous>, transform_indices = @transform_3, window_bounds = array<i64: 8, 128>}]} {
    %c0 = arith.constant 0 : index
    %c0_0 = arith.constant 0 : index
    %0 = vector.load %arg2[%c0, %c0_0] : memref<128x512xf32, #tpu.memory_space<vmem>>, vector<128x512xf32>
    %cst = arith.constant 0.000000e+00 : f32
    %1 = vector.broadcast %cst : f32 to vector<8x128xf32>
    %cst_1 = arith.constant 0.000000e+00 : f32
    %2 = vector.broadcast %cst_1 : f32 to vector<8x128xf32>
    %c0_i32 = arith.constant 0 : i32
    %3 = arith.index_cast %c0_i32 : i32 to index
    %c0_2 = arith.constant 0 : index
    %c0_3 = arith.constant 0 : index
    %4 = vector.load %arg1[%3, %c0_2, %c0_3] : memref<8x8x512xf32, #tpu.memory_space<vmem>>, vector<1x8x512xf32>
    %5 = vector.shape_cast %4 : vector<1x8x512xf32> to vector<8x512xf32>
    %cst_4 = arith.constant dense<0.000000e+00> : vector<8x512xf32>
    %6 = tpu.matmul %1, %0, %cst_4 {dimension_numbers = #tpu.dot_dimension_numbers<[1], [0], [0], [1], [0, 0, 1, 1], [], []>} : vector<8x128xf32>, vector<128x512xf32>, vector<8x512xf32> -> vector<8x512xf32>
    %7 = arith.addf %5, %6 : vector<8x512xf32>
    %8 = vector.extract_strided_slice %7 {offsets = [0, 0], sizes = [8, 128], strides = [1, 1]} : vector<8x512xf32> to vector<8x128xf32>
    %9 = arith.negf %8 : vector<8x128xf32>
    %10 = math.exp %9 : vector<8x128xf32>
    %cst_5 = arith.constant 1.000000e+00 : f32
    %11 = vector.broadcast %cst_5 : f32 to vector<8x128xf32>
    %12 = arith.addf %11, %10 : vector<8x128xf32>
    %13 = arith.divf %11, %12 : vector<8x128xf32>
    %14 = vector.extract_strided_slice %7 {offsets = [0, 128], sizes = [8, 128], strides = [1, 1]} : vector<8x512xf32> to vector<8x128xf32>
    %15 = arith.negf %14 : vector<8x128xf32>
    %16 = math.exp %15 : vector<8x128xf32>
    %cst_6 = arith.constant 1.000000e+00 : f32
    %17 = vector.broadcast %cst_6 : f32 to vector<8x128xf32>
    %18 = arith.addf %17, %16 : vector<8x128xf32>
    %19 = arith.divf %17, %18 : vector<8x128xf32>
    %20 = vector.extract_strided_slice %7 {offsets = [0, 256], sizes = [8, 128], strides = [1, 1]} : vector<8x512xf32> to vector<8x128xf32>
    %21 = math.tanh %20 : vector<8x128xf32>
    %22 = vector.extract_strided_slice %7 {offsets = [0, 384], sizes = [8, 128], strides = [1, 1]} : vector<8x512xf32> to vector<8x128xf32>
    %23 = arith.negf %22 : vector<8x128xf32>
    %24 = math.exp %23 : vector<8x128xf32>
    %cst_7 = arith.constant 1.000000e+00 : f32
    %25 = vector.broadcast %cst_7 : f32 to vector<8x128xf32>
    %26 = arith.addf %25, %24 : vector<8x128xf32>
    %27 = arith.divf %25, %26 : vector<8x128xf32>
    %28 = arith.mulf %19, %2 : vector<8x128xf32>
    %29 = arith.mulf %13, %21 : vector<8x128xf32>
    %30 = arith.addf %28, %29 : vector<8x128xf32>
    %31 = math.tanh %30 : vector<8x128xf32>
    %32 = arith.mulf %27, %31 : vector<8x128xf32>
    %c1_i32 = arith.constant 1 : i32
    %33 = arith.index_cast %c1_i32 : i32 to index
    %c0_8 = arith.constant 0 : index
    %c0_9 = arith.constant 0 : index
    %34 = vector.load %arg1[%33, %c0_8, %c0_9] : memref<8x8x512xf32, #tpu.memory_space<vmem>>, vector<1x8x512xf32>
    %35 = vector.shape_cast %34 : vector<1x8x512xf32> to vector<8x512xf32>
    %cst_10 = arith.constant dense<0.000000e+00> : vector<8x512xf32>
    %36 = tpu.matmul %32, %0, %cst_10 {dimension_numbers = #tpu.dot_dimension_numbers<[1], [0], [0], [1], [0, 0, 1, 1], [], []>} : vector<8x128xf32>, vector<128x512xf32>, vector<8x512xf32> -> vector<8x512xf32>
    %37 = arith.addf %35, %36 : vector<8x512xf32>
    %38 = vector.extract_strided_slice %37 {offsets = [0, 0], sizes = [8, 128], strides = [1, 1]} : vector<8x512xf32> to vector<8x128xf32>
    %39 = arith.negf %38 : vector<8x128xf32>
    %40 = math.exp %39 : vector<8x128xf32>
    %cst_11 = arith.constant 1.000000e+00 : f32
    %41 = vector.broadcast %cst_11 : f32 to vector<8x128xf32>
    %42 = arith.addf %41, %40 : vector<8x128xf32>
    %43 = arith.divf %41, %42 : vector<8x128xf32>
    %44 = vector.extract_strided_slice %37 {offsets = [0, 128], sizes = [8, 128], strides = [1, 1]} : vector<8x512xf32> to vector<8x128xf32>
    %45 = arith.negf %44 : vector<8x128xf32>
    %46 = math.exp %45 : vector<8x128xf32>
    %cst_12 = arith.constant 1.000000e+00 : f32
    %47 = vector.broadcast %cst_12 : f32 to vector<8x128xf32>
    %48 = arith.addf %47, %46 : vector<8x128xf32>
    %49 = arith.divf %47, %48 : vector<8x128xf32>
    %50 = vector.extract_strided_slice %37 {offsets = [0, 256], sizes = [8, 128], strides = [1, 1]} : vector<8x512xf32> to vector<8x128xf32>
    %51 = math.tanh %50 : vector<8x128xf32>
    %52 = vector.extract_strided_slice %37 {offsets = [0, 384], sizes = [8, 128], strides = [1, 1]} : vector<8x512xf32> to vector<8x128xf32>
    %53 = arith.negf %52 : vector<8x128xf32>
    %54 = math.exp %53 : vector<8x128xf32>
    %cst_13 = arith.constant 1.000000e+00 : f32
    %55 = vector.broadcast %cst_13 : f32 to vector<8x128xf32>
    %56 = arith.addf %55, %54 : vector<8x128xf32>
    %57 = arith.divf %55, %56 : vector<8x128xf32>
    %58 = arith.mulf %49, %30 : vector<8x128xf32>
    %59 = arith.mulf %43, %51 : vector<8x128xf32>
    %60 = arith.addf %58, %59 : vector<8x128xf32>
    %61 = math.tanh %60 : vector<8x128xf32>
    %62 = arith.mulf %57, %61 : vector<8x128xf32>
    %c2_i32 = arith.constant 2 : i32
    %63 = arith.index_cast %c2_i32 : i32 to index
    %c0_14 = arith.constant 0 : index
    %c0_15 = arith.constant 0 : index
    %64 = vector.load %arg1[%63, %c0_14, %c0_15] : memref<8x8x512xf32, #tpu.memory_space<vmem>>, vector<1x8x512xf32>
    %65 = vector.shape_cast %64 : vector<1x8x512xf32> to vector<8x512xf32>
    %cst_16 = arith.constant dense<0.000000e+00> : vector<8x512xf32>
    %66 = tpu.matmul %62, %0, %cst_16 {dimension_numbers = #tpu.dot_dimension_numbers<[1], [0], [0], [1], [0, 0, 1, 1], [], []>} : vector<8x128xf32>, vector<128x512xf32>, vector<8x512xf32> -> vector<8x512xf32>
    %67 = arith.addf %65, %66 : vector<8x512xf32>
    %68 = vector.extract_strided_slice %67 {offsets = [0, 0], sizes = [8, 128], strides = [1, 1]} : vector<8x512xf32> to vector<8x128xf32>
    %69 = arith.negf %68 : vector<8x128xf32>
    %70 = math.exp %69 : vector<8x128xf32>
    %cst_17 = arith.constant 1.000000e+00 : f32
    %71 = vector.broadcast %cst_17 : f32 to vector<8x128xf32>
    %72 = arith.addf %71, %70 : vector<8x128xf32>
    %73 = arith.divf %71, %72 : vector<8x128xf32>
    %74 = vector.extract_strided_slice %67 {offsets = [0, 128], sizes = [8, 128], strides = [1, 1]} : vector<8x512xf32> to vector<8x128xf32>
    %75 = arith.negf %74 : vector<8x128xf32>
    %76 = math.exp %75 : vector<8x128xf32>
    %cst_18 = arith.constant 1.000000e+00 : f32
    %77 = vector.broadcast %cst_18 : f32 to vector<8x128xf32>
    %78 = arith.addf %77, %76 : vector<8x128xf32>
    %79 = arith.divf %77, %78 : vector<8x128xf32>
    %80 = vector.extract_strided_slice %67 {offsets = [0, 256], sizes = [8, 128], strides = [1, 1]} : vector<8x512xf32> to vector<8x128xf32>
    %81 = math.tanh %80 : vector<8x128xf32>
    %82 = vector.extract_strided_slice %67 {offsets = [0, 384], sizes = [8, 128], strides = [1, 1]} : vector<8x512xf32> to vector<8x128xf32>
    %83 = arith.negf %82 : vector<8x128xf32>
    %84 = math.exp %83 : vector<8x128xf32>
    %cst_19 = arith.constant 1.000000e+00 : f32
    %85 = vector.broadcast %cst_19 : f32 to vector<8x128xf32>
    %86 = arith.addf %85, %84 : vector<8x128xf32>
    %87 = arith.divf %85, %86 : vector<8x128xf32>
    %88 = arith.mulf %79, %60 : vector<8x128xf32>
    %89 = arith.mulf %73, %81 : vector<8x128xf32>
    %90 = arith.addf %88, %89 : vector<8x128xf32>
    %91 = math.tanh %90 : vector<8x128xf32>
    %92 = arith.mulf %87, %91 : vector<8x128xf32>
    %c3_i32 = arith.constant 3 : i32
    %93 = arith.index_cast %c3_i32 : i32 to index
    %c0_20 = arith.constant 0 : index
    %c0_21 = arith.constant 0 : index
    %94 = vector.load %arg1[%93, %c0_20, %c0_21] : memref<8x8x512xf32, #tpu.memory_space<vmem>>, vector<1x8x512xf32>
    %95 = vector.shape_cast %94 : vector<1x8x512xf32> to vector<8x512xf32>
    %cst_22 = arith.constant dense<0.000000e+00> : vector<8x512xf32>
    %96 = tpu.matmul %92, %0, %cst_22 {dimension_numbers = #tpu.dot_dimension_numbers<[1], [0], [0], [1], [0, 0, 1, 1], [], []>} : vector<8x128xf32>, vector<128x512xf32>, vector<8x512xf32> -> vector<8x512xf32>
    %97 = arith.addf %95, %96 : vector<8x512xf32>
    %98 = vector.extract_strided_slice %97 {offsets = [0, 0], sizes = [8, 128], strides = [1, 1]} : vector<8x512xf32> to vector<8x128xf32>
    %99 = arith.negf %98 : vector<8x128xf32>
    %100 = math.exp %99 : vector<8x128xf32>
    %cst_23 = arith.constant 1.000000e+00 : f32
    %101 = vector.broadcast %cst_23 : f32 to vector<8x128xf32>
    %102 = arith.addf %101, %100 : vector<8x128xf32>
    %103 = arith.divf %101, %102 : vector<8x128xf32>
    %104 = vector.extract_strided_slice %97 {offsets = [0, 128], sizes = [8, 128], strides = [1, 1]} : vector<8x512xf32> to vector<8x128xf32>
    %105 = arith.negf %104 : vector<8x128xf32>
    %106 = math.exp %105 : vector<8x128xf32>
    %cst_24 = arith.constant 1.000000e+00 : f32
    %107 = vector.broadcast %cst_24 : f32 to vector<8x128xf32>
    %108 = arith.addf %107, %106 : vector<8x128xf32>
    %109 = arith.divf %107, %108 : vector<8x128xf32>
    %110 = vector.extract_strided_slice %97 {offsets = [0, 256], sizes = [8, 128], strides = [1, 1]} : vector<8x512xf32> to vector<8x128xf32>
    %111 = math.tanh %110 : vector<8x128xf32>
    %112 = vector.extract_strided_slice %97 {offsets = [0, 384], sizes = [8, 128], strides = [1, 1]} : vector<8x512xf32> to vector<8x128xf32>
    %113 = arith.negf %112 : vector<8x128xf32>
    %114 = math.exp %113 : vector<8x128xf32>
    %cst_25 = arith.constant 1.000000e+00 : f32
    %115 = vector.broadcast %cst_25 : f32 to vector<8x128xf32>
    %116 = arith.addf %115, %114 : vector<8x128xf32>
    %117 = arith.divf %115, %116 : vector<8x128xf32>
    %118 = arith.mulf %109, %90 : vector<8x128xf32>
    %119 = arith.mulf %103, %111 : vector<8x128xf32>
    %120 = arith.addf %118, %119 : vector<8x128xf32>
    %121 = math.tanh %120 : vector<8x128xf32>
    %122 = arith.mulf %117, %121 : vector<8x128xf32>
    %c4_i32 = arith.constant 4 : i32
    %123 = arith.index_cast %c4_i32 : i32 to index
    %c0_26 = arith.constant 0 : index
    %c0_27 = arith.constant 0 : index
    %124 = vector.load %arg1[%123, %c0_26, %c0_27] : memref<8x8x512xf32, #tpu.memory_space<vmem>>, vector<1x8x512xf32>
    %125 = vector.shape_cast %124 : vector<1x8x512xf32> to vector<8x512xf32>
    %cst_28 = arith.constant dense<0.000000e+00> : vector<8x512xf32>
    %126 = tpu.matmul %122, %0, %cst_28 {dimension_numbers = #tpu.dot_dimension_numbers<[1], [0], [0], [1], [0, 0, 1, 1], [], []>} : vector<8x128xf32>, vector<128x512xf32>, vector<8x512xf32> -> vector<8x512xf32>
    %127 = arith.addf %125, %126 : vector<8x512xf32>
    %128 = vector.extract_strided_slice %127 {offsets = [0, 0], sizes = [8, 128], strides = [1, 1]} : vector<8x512xf32> to vector<8x128xf32>
    %129 = arith.negf %128 : vector<8x128xf32>
    %130 = math.exp %129 : vector<8x128xf32>
    %cst_29 = arith.constant 1.000000e+00 : f32
    %131 = vector.broadcast %cst_29 : f32 to vector<8x128xf32>
    %132 = arith.addf %131, %130 : vector<8x128xf32>
    %133 = arith.divf %131, %132 : vector<8x128xf32>
    %134 = vector.extract_strided_slice %127 {offsets = [0, 128], sizes = [8, 128], strides = [1, 1]} : vector<8x512xf32> to vector<8x128xf32>
    %135 = arith.negf %134 : vector<8x128xf32>
    %136 = math.exp %135 : vector<8x128xf32>
    %cst_30 = arith.constant 1.000000e+00 : f32
    %137 = vector.broadcast %cst_30 : f32 to vector<8x128xf32>
    %138 = arith.addf %137, %136 : vector<8x128xf32>
    %139 = arith.divf %137, %138 : vector<8x128xf32>
    %140 = vector.extract_strided_slice %127 {offsets = [0, 256], sizes = [8, 128], strides = [1, 1]} : vector<8x512xf32> to vector<8x128xf32>
    %141 = math.tanh %140 : vector<8x128xf32>
    %142 = vector.extract_strided_slice %127 {offsets = [0, 384], sizes = [8, 128], strides = [1, 1]} : vector<8x512xf32> to vector<8x128xf32>
    %143 = arith.negf %142 : vector<8x128xf32>
    %144 = math.exp %143 : vector<8x128xf32>
    %cst_31 = arith.constant 1.000000e+00 : f32
    %145 = vector.broadcast %cst_31 : f32 to vector<8x128xf32>
    %146 = arith.addf %145, %144 : vector<8x128xf32>
    %147 = arith.divf %145, %146 : vector<8x128xf32>
    %148 = arith.mulf %139, %120 : vector<8x128xf32>
    %149 = arith.mulf %133, %141 : vector<8x128xf32>
    %150 = arith.addf %148, %149 : vector<8x128xf32>
    %151 = math.tanh %150 : vector<8x128xf32>
    %152 = arith.mulf %147, %151 : vector<8x128xf32>
    %c5_i32 = arith.constant 5 : i32
    %153 = arith.index_cast %c5_i32 : i32 to index
    %c0_32 = arith.constant 0 : index
    %c0_33 = arith.constant 0 : index
    %154 = vector.load %arg1[%153, %c0_32, %c0_33] : memref<8x8x512xf32, #tpu.memory_space<vmem>>, vector<1x8x512xf32>
    %155 = vector.shape_cast %154 : vector<1x8x512xf32> to vector<8x512xf32>
    %cst_34 = arith.constant dense<0.000000e+00> : vector<8x512xf32>
    %156 = tpu.matmul %152, %0, %cst_34 {dimension_numbers = #tpu.dot_dimension_numbers<[1], [0], [0], [1], [0, 0, 1, 1], [], []>} : vector<8x128xf32>, vector<128x512xf32>, vector<8x512xf32> -> vector<8x512xf32>
    %157 = arith.addf %155, %156 : vector<8x512xf32>
    %158 = vector.extract_strided_slice %157 {offsets = [0, 0], sizes = [8, 128], strides = [1, 1]} : vector<8x512xf32> to vector<8x128xf32>
    %159 = arith.negf %158 : vector<8x128xf32>
    %160 = math.exp %159 : vector<8x128xf32>
    %cst_35 = arith.constant 1.000000e+00 : f32
    %161 = vector.broadcast %cst_35 : f32 to vector<8x128xf32>
    %162 = arith.addf %161, %160 : vector<8x128xf32>
    %163 = arith.divf %161, %162 : vector<8x128xf32>
    %164 = vector.extract_strided_slice %157 {offsets = [0, 128], sizes = [8, 128], strides = [1, 1]} : vector<8x512xf32> to vector<8x128xf32>
    %165 = arith.negf %164 : vector<8x128xf32>
    %166 = math.exp %165 : vector<8x128xf32>
    %cst_36 = arith.constant 1.000000e+00 : f32
    %167 = vector.broadcast %cst_36 : f32 to vector<8x128xf32>
    %168 = arith.addf %167, %166 : vector<8x128xf32>
    %169 = arith.divf %167, %168 : vector<8x128xf32>
    %170 = vector.extract_strided_slice %157 {offsets = [0, 256], sizes = [8, 128], strides = [1, 1]} : vector<8x512xf32> to vector<8x128xf32>
    %171 = math.tanh %170 : vector<8x128xf32>
    %172 = vector.extract_strided_slice %157 {offsets = [0, 384], sizes = [8, 128], strides = [1, 1]} : vector<8x512xf32> to vector<8x128xf32>
    %173 = arith.negf %172 : vector<8x128xf32>
    %174 = math.exp %173 : vector<8x128xf32>
    %cst_37 = arith.constant 1.000000e+00 : f32
    %175 = vector.broadcast %cst_37 : f32 to vector<8x128xf32>
    %176 = arith.addf %175, %174 : vector<8x128xf32>
    %177 = arith.divf %175, %176 : vector<8x128xf32>
    %178 = arith.mulf %169, %150 : vector<8x128xf32>
    %179 = arith.mulf %163, %171 : vector<8x128xf32>
    %180 = arith.addf %178, %179 : vector<8x128xf32>
    %181 = math.tanh %180 : vector<8x128xf32>
    %182 = arith.mulf %177, %181 : vector<8x128xf32>
    %c6_i32 = arith.constant 6 : i32
    %183 = arith.index_cast %c6_i32 : i32 to index
    %c0_38 = arith.constant 0 : index
    %c0_39 = arith.constant 0 : index
    %184 = vector.load %arg1[%183, %c0_38, %c0_39] : memref<8x8x512xf32, #tpu.memory_space<vmem>>, vector<1x8x512xf32>
    %185 = vector.shape_cast %184 : vector<1x8x512xf32> to vector<8x512xf32>
    %cst_40 = arith.constant dense<0.000000e+00> : vector<8x512xf32>
    %186 = tpu.matmul %182, %0, %cst_40 {dimension_numbers = #tpu.dot_dimension_numbers<[1], [0], [0], [1], [0, 0, 1, 1], [], []>} : vector<8x128xf32>, vector<128x512xf32>, vector<8x512xf32> -> vector<8x512xf32>
    %187 = arith.addf %185, %186 : vector<8x512xf32>
    %188 = vector.extract_strided_slice %187 {offsets = [0, 0], sizes = [8, 128], strides = [1, 1]} : vector<8x512xf32> to vector<8x128xf32>
    %189 = arith.negf %188 : vector<8x128xf32>
    %190 = math.exp %189 : vector<8x128xf32>
    %cst_41 = arith.constant 1.000000e+00 : f32
    %191 = vector.broadcast %cst_41 : f32 to vector<8x128xf32>
    %192 = arith.addf %191, %190 : vector<8x128xf32>
    %193 = arith.divf %191, %192 : vector<8x128xf32>
    %194 = vector.extract_strided_slice %187 {offsets = [0, 128], sizes = [8, 128], strides = [1, 1]} : vector<8x512xf32> to vector<8x128xf32>
    %195 = arith.negf %194 : vector<8x128xf32>
    %196 = math.exp %195 : vector<8x128xf32>
    %cst_42 = arith.constant 1.000000e+00 : f32
    %197 = vector.broadcast %cst_42 : f32 to vector<8x128xf32>
    %198 = arith.addf %197, %196 : vector<8x128xf32>
    %199 = arith.divf %197, %198 : vector<8x128xf32>
    %200 = vector.extract_strided_slice %187 {offsets = [0, 256], sizes = [8, 128], strides = [1, 1]} : vector<8x512xf32> to vector<8x128xf32>
    %201 = math.tanh %200 : vector<8x128xf32>
    %202 = vector.extract_strided_slice %187 {offsets = [0, 384], sizes = [8, 128], strides = [1, 1]} : vector<8x512xf32> to vector<8x128xf32>
    %203 = arith.negf %202 : vector<8x128xf32>
    %204 = math.exp %203 : vector<8x128xf32>
    %cst_43 = arith.constant 1.000000e+00 : f32
    %205 = vector.broadcast %cst_43 : f32 to vector<8x128xf32>
    %206 = arith.addf %205, %204 : vector<8x128xf32>
    %207 = arith.divf %205, %206 : vector<8x128xf32>
    %208 = arith.mulf %199, %180 : vector<8x128xf32>
    %209 = arith.mulf %193, %201 : vector<8x128xf32>
    %210 = arith.addf %208, %209 : vector<8x128xf32>
    %211 = math.tanh %210 : vector<8x128xf32>
    %212 = arith.mulf %207, %211 : vector<8x128xf32>
    %c7_i32 = arith.constant 7 : i32
    %213 = arith.index_cast %c7_i32 : i32 to index
    %c0_44 = arith.constant 0 : index
    %c0_45 = arith.constant 0 : index
    %214 = vector.load %arg1[%213, %c0_44, %c0_45] : memref<8x8x512xf32, #tpu.memory_space<vmem>>, vector<1x8x512xf32>
    %215 = vector.shape_cast %214 : vector<1x8x512xf32> to vector<8x512xf32>
    %cst_46 = arith.constant dense<0.000000e+00> : vector<8x512xf32>
    %216 = tpu.matmul %212, %0, %cst_46 {dimension_numbers = #tpu.dot_dimension_numbers<[1], [0], [0], [1], [0, 0, 1, 1], [], []>} : vector<8x128xf32>, vector<128x512xf32>, vector<8x512xf32> -> vector<8x512xf32>
    %217 = arith.addf %215, %216 : vector<8x512xf32>
    %218 = vector.extract_strided_slice %217 {offsets = [0, 0], sizes = [8, 128], strides = [1, 1]} : vector<8x512xf32> to vector<8x128xf32>
    %219 = arith.negf %218 : vector<8x128xf32>
    %220 = math.exp %219 : vector<8x128xf32>
    %cst_47 = arith.constant 1.000000e+00 : f32
    %221 = vector.broadcast %cst_47 : f32 to vector<8x128xf32>
    %222 = arith.addf %221, %220 : vector<8x128xf32>
    %223 = arith.divf %221, %222 : vector<8x128xf32>
    %224 = vector.extract_strided_slice %217 {offsets = [0, 128], sizes = [8, 128], strides = [1, 1]} : vector<8x512xf32> to vector<8x128xf32>
    %225 = arith.negf %224 : vector<8x128xf32>
    %226 = math.exp %225 : vector<8x128xf32>
    %cst_48 = arith.constant 1.000000e+00 : f32
    %227 = vector.broadcast %cst_48 : f32 to vector<8x128xf32>
    %228 = arith.addf %227, %226 : vector<8x128xf32>
    %229 = arith.divf %227, %228 : vector<8x128xf32>
    %230 = vector.extract_strided_slice %217 {offsets = [0, 256], sizes = [8, 128], strides = [1, 1]} : vector<8x512xf32> to vector<8x128xf32>
    %231 = math.tanh %230 : vector<8x128xf32>
    %232 = vector.extract_strided_slice %217 {offsets = [0, 384], sizes = [8, 128], strides = [1, 1]} : vector<8x512xf32> to vector<8x128xf32>
    %233 = arith.negf %232 : vector<8x128xf32>
    %234 = math.exp %233 : vector<8x128xf32>
    %cst_49 = arith.constant 1.000000e+00 : f32
    %235 = vector.broadcast %cst_49 : f32 to vector<8x128xf32>
    %236 = arith.addf %235, %234 : vector<8x128xf32>
    %237 = arith.divf %235, %236 : vector<8x128xf32>
    %238 = arith.mulf %229, %210 : vector<8x128xf32>
    %239 = arith.mulf %223, %231 : vector<8x128xf32>
    %240 = arith.addf %238, %239 : vector<8x128xf32>
    %241 = math.tanh %240 : vector<8x128xf32>
    %242 = arith.mulf %237, %241 : vector<8x128xf32>
    %c8_i32 = arith.constant 8 : i32
    %c0_50 = arith.constant 0 : index
    %c0_51 = arith.constant 0 : index
    %243 = vector.load %arg3[%c0_50, %c0_51] : memref<8x128xf32, #tpu.memory_space<vmem>>, vector<8x128xf32>
    tpu.vector_store %arg3[%c0_50, %c0_51], %242 {strides = array<i32>} : memref<8x128xf32, #tpu.memory_space<vmem>>, vector<8x128xf32>,
    %c0_52 = arith.constant 0 : index
    %c0_53 = arith.constant 0 : index
    %244 = vector.load %arg4[%c0_52, %c0_53] : memref<8x128xf32, #tpu.memory_space<vmem>>, vector<8x128xf32>
    tpu.vector_store %arg4[%c0_52, %c0_53], %240 {strides = array<i32>} : memref<8x128xf32, #tpu.memory_space<vmem>>, vector<8x128xf32>,
    return
  }
  func.func @transform_0(%arg0: i32) -> (i32, i32, i32) {
    %c0_i32 = arith.constant 0 : i32
    %c0_i32_0 = arith.constant 0 : i32
    %c0_i32_1 = arith.constant 0 : i32
    %c0_i32_2 = arith.constant 0 : i32
    return %c0_i32, %c0_i32_0, %c0_i32_1 : i32, i32, i32
  }
  func.func @transform_1(%arg0: i32) -> (i32, i32) {
    %c0_i32 = arith.constant 0 : i32
    %c0_i32_0 = arith.constant 0 : i32
    %c0_i32_1 = arith.constant 0 : i32
    return %c0_i32, %c0_i32_0 : i32, i32
  }
  func.func @transform_2(%arg0: i32) -> (i32, i32) {
    %c0_i32 = arith.constant 0 : i32
    %c0_i32_0 = arith.constant 0 : i32
    %c0_i32_1 = arith.constant 0 : i32
    return %c0_i32, %c0_i32_0 : i32, i32
  }
  func.func @transform_3(%arg0: i32) -> (i32, i32) {
    %c0_i32 = arith.constant 0 : i32
    %c0_i32_0 = arith.constant 0 : i32
    %c0_i32_1 = arith.constant 0 : i32
    return %c0_i32, %c0_i32_0 : i32, i32
  }
}

</mosaic_0001>

<bundles_post_ra>
// kernel: tpu_custom_call.1
= control target key start
LH: loop header
LB: loop body
LE: loop exit
PB: predicated region body
PF: predicated region fallthrough
CT: control target
= control target key end

     0   :  { %9 = vsyncpa [#allocation3], 0  ;;  %s2742_s0 = inlined_call_operand.hbm [shape: f32[8,8,512], index: 0, kind: input, shape index: {}]   ;;  %s2743_s1 = inlined_call_operand.hbm [shape: f32[128,512], index: 1, kind: input, shape index: {}]   ;;  %s2744_s2 = inlined_call_operand.hbm [shape: f32[8,128], index: 2, kind: output, shape index: {0}]   ;;  %s2745_s3 = inlined_call_operand.hbm [shape: f32[8,128], index: 3, kind: output, shape index: {1}]  }
   0x1   :  { %10 = vsyncpa [#allocation6], 0 }
   0x2   :  { %11 = vsyncpa [#allocation4], 0 }
   0x3   :  { %12 = vsyncpa [#allocation9], 0  ;;  %s2305_s12 = smov [#allocation2]   ;;  %s2209_s16 = scalar_lea.hbm %s2742_s0, 4096 }
   0x4   :  { %s18_s13 = sshll.u32 %s2305_s12, 4  ;;  %p2210_p0 = scmp.ne.s32.totalorder %s2742_s0, %s2209_s16  ;;  %s19_s13 = int_to_ptr.vmem [resolvable:$true] %s18_s13 }
   0x5   :  { %p2213_p1 = scmp.lt.u32.totalorder %s2209_s16, %s2742_s0 }
   0x7   :  { %p2215_p2 = pnand %p2213_p1, %p2210_p0 }
   0x9   :  { %2218 = shalt.err (!%p2215_p2)
}
   0xa   :  { %s2219_s21 = scalar_lea.vmem %s19_s13, 4096  ;;  %p2224_p4 = scmp.lt.s32.totalorder %s19_s13, %s19_s13 }
   0xb   :  { %p2220_p3 = scmp.ne.s32.totalorder %s19_s13, %s2219_s21  ;;  %p2225_p5 = scmp.lt.s32.totalorder %s2219_s21, %s2219_s21 }
   0xd   :  { %p2226_p6 = por %p2225_p5, %p2224_p4 }
   0xf   :  { %p2227_p7 = pnand %p2226_p6, %p2220_p3 }
  0x11   :  { %2230 = shalt.err (!%p2227_p7)
}
  0x12   :  { %s2306_s22 = smov 512   ;;  %s2307_s23 = smov 32  }
  0x13   :  { %24 = dma.hbm_to_vmem [thread:$0]  %s2742_s0, 4096, %s19_s13, [#allocation3], %s2306_s22, %s2306_s22, %s2307_s23  }
  0x14   :  { %s2308_s26 = smov [#allocation5]   ;;  %s2231_s30 = scalar_lea.hbm %s2743_s1, 8192 }
  0x15   :  { %s30_s27 = sshll.u32 %s2308_s26, 4  ;;  %p2232_p8 = scmp.ne.s32.totalorder %s2743_s1, %s2231_s30  ;;  %s31_s27 = int_to_ptr.vmem [resolvable:$true] %s30_s27 }
  0x16   :  { %p2235_p9 = scmp.lt.u32.totalorder %s2231_s30, %s2743_s1 }
  0x18   :  { %p2237_p10 = pnand %p2235_p9, %p2232_p8 }
  0x1a   :  { %2240 = shalt.err (!%p2237_p10)
}
  0x1b   :  { %s2241_s8 = scalar_lea.vmem %s31_s27, 8192  ;;  %p2246_p12 = scmp.lt.s32.totalorder %s31_s27, %s31_s27 }
  0x1c   :  { %p2242_p11 = scmp.ne.s32.totalorder %s31_s27, %s2241_s8  ;;  %p2247_p13 = scmp.lt.s32.totalorder %s2241_s8, %s2241_s8 }
  0x1e   :  { %p2248_p0 = por %p2247_p13, %p2246_p12 }
  0x20   :  { %p2249_p1 = pnand %p2248_p0, %p2242_p11 }
  0x22   :  { %2252 = shalt.err (!%p2249_p1)
}
  0x23   :  { %36 = dma.hbm_to_vmem [thread:$0]  %s2743_s1, 8192, %s31_s27, [#allocation6], %s2306_s22, %s2306_s22, %s2307_s23  }
  0x24   :  { %2297 = dma.done.wait [#allocation3], 4096  }
  0x25   :  { %2298 = vsyncadd [#allocation3], 4294963200 }
  0x26   :  { %2299 = dma.done.wait [#allocation6], 8192  }
  0x27   :  { %2300 = vsyncadd [#allocation6], 4294959104  ;;  %v2309_v0 = vmov 0.0   ;;  %v44_v1 = vld [vmem:[#allocation5 + $0x8] sm:$0xff]  ;;  %v43_v3 = vld [vmem:[#allocation5] sm:$0xff]  ;;  %s2310_s1 = smov [#allocation8]  }
  0x28   :  { %175 = vmatprep.mubr.f32.mxu0 %v2309_v0  ;;  %246 = vmatprep.mubr.f32.mxu1 %v2309_v0  ;;  %v48_v2 = vld [vmem:[#allocation5 + $0x28] sm:$0xff]  ;;  %v47_v5 = vld [vmem:[#allocation5 + $0x20] sm:$0xff]  ;;  %v46_v19 = vld [vmem:[#allocation5 + $0x18] sm:$0xff]  ;;  %s1524_s10 = sshll.u32 %s2310_s1, 4  ;;  %s1525_s10 = int_to_ptr.vmem [resolvable:$true] %s1524_s10 }
  0x29   :  { %v2358_v4 = vpack.c.bf16 %v48_v2, %v44_v1  ;;  %v52_v6 = vld [vmem:[#allocation5 + $0x48] sm:$0xff]  ;;  %v2360_v8 = vpack.c.bf16 %v47_v5, %v43_v3  ;;  %v51_v10 = vld [vmem:[#allocation5 + $0x40] sm:$0xff]  ;;  %v50_v20 = vld [vmem:[#allocation5 + $0x38] sm:$0xff]  ;;  %s2253_s11 = scalar_lea.vmem %s1525_s10, 128  ;;  %p2258_p3 = scmp.lt.s32.totalorder %s1525_s10, %s1525_s10 }
  0x2a   :  { %v56_v7 = vld [vmem:[#allocation5 + $0x68] sm:$0xff]  ;;  %v55_v11 = vld [vmem:[#allocation5 + $0x60] sm:$0xff]  ;;  %v2371_v22 = vpack.c.bf16 %v50_v20, %v46_v19  ;;  %v45_v23 = vld [vmem:[#allocation5 + $0x10] sm:$0xff]  ;;  %p2254_p2 = scmp.ne.s32.totalorder %s1525_s10, %s2253_s11  ;;  %p2259_p4 = scmp.lt.s32.totalorder %s2253_s11, %s2253_s11 }
  0x2b   :  { %v2362_v9 = vpack.c.bf16 %v56_v7, %v52_v6  ;;  %v60_v12 = vld [vmem:[#allocation5 + $0x88] sm:$0xff]  ;;  %1563 = vmatprep.subr.bf16.mxu0 %v2358_v4  ;;  %v2366_v14 = vpack.c.bf16 %v55_v11, %v51_v10  ;;  %v59_v15 = vld [vmem:[#allocation5 + $0x80] sm:$0xff]  ;;  %v49_v24 = vld [vmem:[#allocation5 + $0x30] sm:$0xff] }
  0x2c   :  { %v64_v13 = vld [vmem:[#allocation5 + $0xa8] sm:$0xff]  ;;  %1565 = vmatpush1.bf16.msra.mxu0 %v2360_v8  ;;  %v63_v16 = vld [vmem:[#allocation5 + $0xa0] sm:$0xff]  ;;  %v2373_v25 = vpack.c.bf16 %v49_v24, %v45_v23  ;;  %1595 = vmatprep.subr.bf16.mxu1 %v2371_v22  ;;  %v54_v27 = vld [vmem:[#allocation5 + $0x58] sm:$0xff]  ;;  %p2260_p5 = por %p2259_p4, %p2258_p3 }
  0x2d   :  { %1567 = vmatprep.subr.bf16.mxu0 %v2362_v9  ;;  %v2369_v17 = vpack.c.bf16 %v64_v13, %v60_v12  ;;  %v68_v18 = vld [vmem:[#allocation5 + $0xc8] sm:$0xff]  ;;  %v2376_v26 = vpack.c.bf16 %v63_v16, %v59_v15  ;;  %v58_v28 = vld [vmem:[#allocation5 + $0x78] sm:$0xff]  ;;  %v53_v29 = vld [vmem:[#allocation5 + $0x50] sm:$0xff] }
  0x2e   :  { %v72_v21 = vld [vmem:[#allocation5 + $0xe8] sm:$0xff]  ;;  %v67_v31 = vld [vmem:[#allocation5 + $0xc0] sm:$0xff]  ;;  %1597 = vmatpush1.bf16.msra.mxu1 %v2373_v25  ;;  %v2383_v33 = vpack.c.bf16 %v58_v28, %v54_v27  ;;  %v57_v34 = vld [vmem:[#allocation5 + $0x70] sm:$0xff]  ;;  %p2261_p6 = pnand %p2260_p5, %p2254_p2 }
  0x2f   :  { %v2380_v30 = vpack.c.bf16 %v72_v21, %v68_v18  ;;  %v71_v32 = vld [vmem:[#allocation5 + $0xe0] sm:$0xff]  ;;  %v76_v35 = vld [vmem:[#allocation5 + $0x108] sm:$0xff]  ;;  %v2385_v37 = vpack.c.bf16 %v57_v34, %v53_v29  ;;  %v62_v38 = vld [vmem:[#allocation5 + $0x98] sm:$0xff] }
  0x30   :  { %1569 = vmatpush1.bf16.msra.mxu0 %v2366_v14  ;;  %v80_v36 = vld [vmem:[#allocation5 + $0x128] sm:$0xff]  ;;  %1599 = vmatprep.subr.bf16.mxu1 %v2383_v33  ;;  %v66_v39 = vld [vmem:[#allocation5 + $0xb8] sm:$0xff]  ;;  %v61_v40 = vld [vmem:[#allocation5 + $0x90] sm:$0xff]  ;;  %v2389_v42 = vpack.c.bf16 %v71_v32, %v67_v31 }
  0x31   :  { %1571 = vmatprep.subr.bf16.mxu0 %v2369_v17  ;;  %v65_v41 = vld [vmem:[#allocation5 + $0xb0] sm:$0xff]  ;;  %v75_v43 = vld [vmem:[#allocation5 + $0x100] sm:$0xff]  ;;  %v2391_v45 = vpack.c.bf16 %v66_v39, %v62_v38  ;;  %v2394_v46 = vpack.c.bf16 %v80_v36, %v76_v35  ;;  %v84_v47 = vld [vmem:[#allocation5 + $0x148] sm:$0xff] }
  0x32   :  { %v79_v44 = vld [vmem:[#allocation5 + $0x120] sm:$0xff]  ;;  %1601 = vmatpush1.bf16.msra.mxu1 %v2385_v37  ;;  %v2397_v48 = vpack.c.bf16 %v65_v41, %v61_v40  ;;  %v70_v49 = vld [vmem:[#allocation5 + $0xd8] sm:$0xff]  ;;  %v88_v51 = vld [vmem:[#allocation5 + $0x168] sm:$0xff] }
  0x33   :  { %v74_v50 = vld [vmem:[#allocation5 + $0xf8] sm:$0xff]  ;;  %1603 = vmatprep.subr.bf16.mxu1 %v2391_v45  ;;  %v69_v53 = vld [vmem:[#allocation5 + $0xd0] sm:$0xff]  ;;  %v2403_v55 = vpack.c.bf16 %v79_v44, %v75_v43  ;;  %v2406_v58 = vpack.c.bf16 %v88_v51, %v84_v47  ;;  %v83_v59 = vld [vmem:[#allocation5 + $0x140] sm:$0xff] }
  0x34   :  { %1573 = vmatpush1.bf16.msra.mxu0 %v2376_v26  ;;  %v2400_v52 = vpack.c.bf16 %v74_v50, %v70_v49  ;;  %v73_v54 = vld [vmem:[#allocation5 + $0xf0] sm:$0xff]  ;;  %v78_v56 = vld [vmem:[#allocation5 + $0x118] sm:$0xff]  ;;  %v87_v60 = vld [vmem:[#allocation5 + $0x160] sm:$0xff] }
  0x35   :  { %1575 = vmatprep.subr.bf16.mxu0 %v2380_v30  ;;  %v82_v57 = vld [vmem:[#allocation5 + $0x138] sm:$0xff]  ;;  %v92_v61 = vld [vmem:[#allocation5 + $0x188] sm:$0xff]  ;;  %v2409_v62 = vpack.c.bf16 %v73_v54, %v69_v53  ;;  %v77_v2 = vld [vmem:[#allocation5 + $0x110] sm:$0xff]  ;;  %v2415_v7 = vpack.c.bf16 %v87_v60, %v83_v59 }
  0x36   :  { %1605 = vmatpush1.bf16.msra.mxu1 %v2397_v48  ;;  %v96_v63 = vld [vmem:[#allocation5 + $0x1a8] sm:$0xff]  ;;  %v2412_v1 = vpack.c.bf16 %v82_v57, %v78_v56  ;;  %v81_v3 = vld [vmem:[#allocation5 + $0x130] sm:$0xff]  ;;  %v86_v5 = vld [vmem:[#allocation5 + $0x158] sm:$0xff] }
  0x37   :  { %1607 = vmatprep.subr.bf16.mxu1 %v2400_v52  ;;  %v90_v6 = vld [vmem:[#allocation5 + $0x178] sm:$0xff]  ;;  %v2418_v10 = vpack.c.bf16 %v96_v63, %v92_v61  ;;  %v91_v11 = vld [vmem:[#allocation5 + $0x180] sm:$0xff]  ;;  %v100_v13 = vld [vmem:[#allocation5 + $0x1c8] sm:$0xff]  ;;  %v2421_v15 = vpack.c.bf16 %v81_v3, %v77_v2 }
  0x38   :  { %1577 = vmatpush1.bf16.msra.mxu0 %v2389_v42  ;;  %v95_v12 = vld [vmem:[#allocation5 + $0x1a0] sm:$0xff]  ;;  %v104_v16 = vld [vmem:[#allocation5 + $0x1e8] sm:$0xff]  ;;  %v2424_v18 = vpack.c.bf16 %v90_v6, %v86_v5  ;;  %v85_v19 = vld [vmem:[#allocation5 + $0x150] sm:$0xff] }
  0x39   :  { %1579 = vmatprep.subr.bf16.mxu0 %v2394_v46  ;;  %v89_v20 = vld [vmem:[#allocation5 + $0x170] sm:$0xff]  ;;  %v94_v21 = vld [vmem:[#allocation5 + $0x198] sm:$0xff]  ;;  %v2427_v24 = vpack.c.bf16 %v95_v12, %v91_v11  ;;  %v2430_v27 = vpack.c.bf16 %v104_v16, %v100_v13  ;;  %v99_v28 = vld [vmem:[#allocation5 + $0x1c0] sm:$0xff] }
  0x3a   :  { %1609 = vmatpush1.bf16.msra.mxu1 %v2409_v62  ;;  %v98_v23 = vld [vmem:[#allocation5 + $0x1b8] sm:$0xff]  ;;  %v103_v29 = vld [vmem:[#allocation5 + $0x1e0] sm:$0xff]  ;;  %v2433_v31 = vpack.c.bf16 %v89_v20, %v85_v19  ;;  %v93_v34 = vld [vmem:[#allocation5 + $0x190] sm:$0xff] }
  0x3b   :  { %1611 = vmatprep.subr.bf16.mxu1 %v2412_v1  ;;  %v2436_v32 = vpack.c.bf16 %v98_v23, %v94_v21  ;;  %v97_v35 = vld [vmem:[#allocation5 + $0x1b0] sm:$0xff]  ;;  %v102_v36 = vld [vmem:[#allocation5 + $0x1d8] sm:$0xff]  ;;  %v2439_v39 = vpack.c.bf16 %v103_v29, %v99_v28  ;;  %v107_v49 = vld [vmem:[#allocation2] sm:$0xff] }
  0x3c   :  { %1581 = vmatpush1.bf16.msra.mxu0 %v2403_v55  ;;  %v106_v38 = vld [vmem:[#allocation5 + $0x1f8] sm:$0xff]  ;;  %v2443_v40 = vpack.c.bf16 %v97_v35, %v93_v34  ;;  %v101_v43 = vld [vmem:[#allocation5 + $0x1d0] sm:$0xff]  ;;  %v108_v50 = vld [vmem:[#allocation2 + $0x8] sm:$0xff] }
  0x3d   :  { %1583 = vmatprep.subr.bf16.mxu0 %v2406_v58  ;;  %v2446_v41 = vpack.c.bf16 %v106_v38, %v102_v36  ;;  %v105_v44 = vld [vmem:[#allocation5 + $0x1f0] sm:$0xff]  ;;  %v110_v60 = vld [vmem:[#allocation2 + $0x18] sm:$0xff] }
  0x3e   :  { %1613 = vmatpush1.bf16.msra.mxu1 %v2421_v15  ;;  %v2450_v47 = vpack.c.bf16 %v105_v44, %v101_v43  ;;  %v109_v3 = vld [vmem:[#allocation2 + $0x10] sm:$0xff]  ;;  %v282_v44 = vld [vmem:[#allocation2 + $0x20] sm:$0xff] }
  0x3f   :  { %1615 = vmatprep.subr.bf16.mxu1 %v2424_v18 }
  0x40   :  { %1585 = vmatpush1.bf16.msra.mxu0 %v2415_v7 }
  0x41   :  { %1587 = vmatprep.subr.bf16.mxu0 %v2418_v10 }
  0x42   :  { %1617 = vmatpush1.bf16.msra.mxu1 %v2433_v31 }
  0x43   :  { %1619 = vmatprep.subr.bf16.mxu1 %v2436_v32 }
  0x44   :  { %1589 = vmatpush1.bf16.msra.mxu0 %v2427_v24 }
  0x45   :  { %1591 = vmatprep.subr.bf16.mxu0 %v2430_v27 }
  0x46   :  { %1621 = vmatpush1.bf16.msra.mxu1 %v2443_v40 }
  0x47   :  { %1623 = vmatprep.subr.bf16.mxu1 %v2446_v41 }
  0x48   :  { %1593 = vmatpush1.bf16.msra.mxu0 %v2439_v39 }
  0x49   :  { %1627 = vmatprep.subr.bf16.mxu0 %v2358_v4 }
  0x4a   :  { %1625 = vmatpush1.bf16.msra.mxu1 %v2450_v47 }
  0x4b   :  { %176 = vmatmul.mubr.f32.vlgmr.msra.gmra.mrb[0].mxu0 %v2309_v0  ;;  %1659 = vmatprep.subr.bf16.mxu1 %v2371_v22 }
  0x4c   :  { %1629 = vmatpush1.bf16.msra.mxu0 %v2360_v8  ;;  %350 = vmatprep.mubr.f32.mxu0 %v2309_v0 }
  0x4d   :  { %1631 = vmatprep.subr.bf16.mxu0 %v2362_v9  ;;  %247 = vmatmul.mubr.f32.vlgmr.msra.gmra.mrb[0].mxu1 %v2309_v0 }
  0x4e   :  { %1661 = vmatpush1.bf16.msra.mxu1 %v2373_v25  ;;  %421 = vmatprep.mubr.f32.mxu1 %v2309_v0 }
  0x4f   :  { %1663 = vmatprep.subr.bf16.mxu1 %v2383_v33 }
  0x50   :  { %1633 = vmatpush1.bf16.msra.mxu0 %v2366_v14 }
  0x51   :  { %1635 = vmatprep.subr.bf16.mxu0 %v2369_v17 }
  0x52   :  { %1665 = vmatpush1.bf16.msra.mxu1 %v2385_v37 }
  0x53   :  { %1667 = vmatprep.subr.bf16.mxu1 %v2391_v45 }
  0x54   :  { %1637 = vmatpush1.bf16.msra.mxu0 %v2376_v26 }
  0x55   :  { %1639 = vmatprep.subr.bf16.mxu0 %v2380_v30 }
  0x56   :  { %1669 = vmatpush1.bf16.msra.mxu1 %v2397_v48 }
  0x57   :  { %1671 = vmatprep.subr.bf16.mxu1 %v2400_v52 }
  0x58   :  { %1641 = vmatpush1.bf16.msra.mxu0 %v2389_v42 }
  0x59   :  { %1643 = vmatprep.subr.bf16.mxu0 %v2394_v46 }
  0x5a   :  { %1673 = vmatpush1.bf16.msra.mxu1 %v2409_v62 }
  0x5b   :  { %1675 = vmatprep.subr.bf16.mxu1 %v2412_v1 }
  0x5c   :  { %1645 = vmatpush1.bf16.msra.mxu0 %v2403_v55 }
  0x5d   :  { %1647 = vmatprep.subr.bf16.mxu0 %v2406_v58 }
  0x5e   :  { %1677 = vmatpush1.bf16.msra.mxu1 %v2421_v15 }
  0x5f   :  { %1679 = vmatprep.subr.bf16.mxu1 %v2424_v18 }
  0x60   :  { %1649 = vmatpush1.bf16.msra.mxu0 %v2415_v7 }
  0x61   :  { %1651 = vmatprep.subr.bf16.mxu0 %v2418_v10 }
  0x62   :  { %1681 = vmatpush1.bf16.msra.mxu1 %v2433_v31 }
  0x63   :  { %1683 = vmatprep.subr.bf16.mxu1 %v2436_v32 }
  0x64   :  { %1653 = vmatpush1.bf16.msra.mxu0 %v2427_v24 }
  0x65   :  { %1655 = vmatprep.subr.bf16.mxu0 %v2430_v27 }
  0x66   :  { %1685 = vmatpush1.bf16.msra.mxu1 %v2443_v40 }
  0x67   :  { %1687 = vmatprep.subr.bf16.mxu1 %v2446_v41 }
  0x68   :  { %1657 = vmatpush1.bf16.msra.mxu0 %v2439_v39 }
  0x69   :  { %1691 = vmatprep.subr.bf16.mxu0 %v2358_v4 }
  0x6a   :  { %1689 = vmatpush1.bf16.msra.mxu1 %v2450_v47 }
  0x6b   :  { %1723 = vmatprep.subr.bf16.mxu1 %v2371_v22 }
 0x11e   :  { %v177_v51 = vpop.f32.mrb[0].mxu0 }
 0x11f   :  { %v253_v53 = vadd.f32 %v177_v51, %v107_v49  ;;  %v179_v54 = vpop.f32.mrb[1].mxu0  ;;  %v283_v49 = vld [vmem:[#allocation2 + $0x28] sm:$0xff] }
 0x120   :  { %v254_v56 = vadd.f32 %v179_v54, %v108_v50  ;;  %v248_v61 = vpop.f32.mrb[0].mxu1 }
 0x121   :  { %v1538_v57 = vmul.f32 -1.442695, %v253_v53  ;;  %v250_v63 = vpop.f32.mrb[1].mxu1  ;;  %v255_v6 = vadd.f32 %v248_v61, %v109_v3  ;;  %v285_v61 = vld [vmem:[#allocation2 + $0x38] sm:$0xff] }
 0x122   :  { %v1539_v59 = vmul.f32 -1.442695, %v254_v56  ;;  %v256_v2 = vadd.f32 %v250_v63, %v110_v60 }
 0x123   :  { %2081 = vpow2.f32 %v1538_v57 }
 0x124   :  { %2083 = vpow2.f32 %v1539_v59  ;;  %v1540_v5 = vmul.f32 -1.442695, %v256_v2  ;;  %v284_v2 = vld [vmem:[#allocation2 + $0x30] sm:$0xff] }
 0x126   :  { %2085 = vpow2.f32 %v1540_v5 }
 0x127   :  { %2087 = vtanh.f32 %v255_v6 }
 0x12d   :  { %v2082_v11 = vpop.eup %2081 }
 0x12e   :  { %v2084_v12 = vpop.eup %2083  ;;  %v260_v13 = vadd.f32 1.0, %v2082_v11 }
 0x12f   :  { %v266_v16 = vadd.f32 1.0, %v2084_v12 }
 0x130   :  { %2089 = vrcp.f32 %v260_v13  ;;  %v2086_v19 = vpop.eup %2085 }
 0x131   :  { %2091 = vrcp.f32 %v266_v16  ;;  %v2088_v20 = vpop.eup %2087  ;;  %v273_v23 = vadd.f32 1.0, %v2086_v19 }
 0x133   :  { %2093 = vrcp.f32 %v273_v23 }
 0x13a   :  { %v2090_v21 = vpop.eup %2089 }
 0x13b   :  { %v2092_v28 = vpop.eup %2091  ;;  %v277_v29 = vmul.f32 %v2090_v21, %v2088_v20 }
 0x13c   :  { %v276_v34 = vmul.f32 0.0, %v2092_v28 }
 0x13d   :  { %v2094_v36 = vpop.eup %2093 }
 0x13e   :  { %v2492_v35 = vadd.f32 %v277_v29, %v276_v34 }
 0x140   :  { %2095 = vtanh.f32 %v2492_v35 }
 0x14a   :  { %v2096_v38 = vpop.eup %2095 }
 0x14b   :  { %v280_v43 = vmul.f32 %v2096_v38, %v2094_v36 }
 0x14d   :  { %351 = vmatmul.mubr.f32.vlgmr.msra.gmra.mrb[2].mxu0 %v280_v43  ;;  %422 = vmatmul.mubr.f32.vlgmr.msra.gmra.mrb[2].mxu1 %v280_v43 }
 0x14e   :  { %1693 = vmatpush1.bf16.msra.mxu0 %v2360_v8  ;;  %1725 = vmatpush1.bf16.msra.mxu1 %v2373_v25 }
 0x14f   :  { %1695 = vmatprep.subr.bf16.mxu0 %v2362_v9  ;;  %1727 = vmatprep.subr.bf16.mxu1 %v2383_v33 }
 0x150   :  { %525 = vmatprep.mubr.f32.mxu0 %v2309_v0  ;;  %596 = vmatprep.mubr.f32.mxu1 %v2309_v0 }
 0x152   :  { %1697 = vmatpush1.bf16.msra.mxu0 %v2366_v14  ;;  %1729 = vmatpush1.bf16.msra.mxu1 %v2385_v37 }
 0x153   :  { %1699 = vmatprep.subr.bf16.mxu0 %v2369_v17  ;;  %1731 = vmatprep.subr.bf16.mxu1 %v2391_v45 }
 0x156   :  { %1701 = vmatpush1.bf16.msra.mxu0 %v2376_v26  ;;  %1733 = vmatpush1.bf16.msra.mxu1 %v2397_v48 }
 0x157   :  { %1703 = vmatprep.subr.bf16.mxu0 %v2380_v30  ;;  %1735 = vmatprep.subr.bf16.mxu1 %v2400_v52 }
 0x15a   :  { %1705 = vmatpush1.bf16.msra.mxu0 %v2389_v42  ;;  %1737 = vmatpush1.bf16.msra.mxu1 %v2409_v62 }
 0x15b   :  { %1707 = vmatprep.subr.bf16.mxu0 %v2394_v46  ;;  %1739 = vmatprep.subr.bf16.mxu1 %v2412_v1 }
 0x15e   :  { %1709 = vmatpush1.bf16.msra.mxu0 %v2403_v55  ;;  %1741 = vmatpush1.bf16.msra.mxu1 %v2421_v15 }
 0x15f   :  { %1711 = vmatprep.subr.bf16.mxu0 %v2406_v58  ;;  %1743 = vmatprep.subr.bf16.mxu1 %v2424_v18 }
 0x162   :  { %1713 = vmatpush1.bf16.msra.mxu0 %v2415_v7  ;;  %1745 = vmatpush1.bf16.msra.mxu1 %v2433_v31 }
 0x163   :  { %1715 = vmatprep.subr.bf16.mxu0 %v2418_v10  ;;  %1747 = vmatprep.subr.bf16.mxu1 %v2436_v32 }
 0x166   :  { %1717 = vmatpush1.bf16.msra.mxu0 %v2427_v24  ;;  %1749 = vmatpush1.bf16.msra.mxu1 %v2443_v40 }
 0x167   :  { %1719 = vmatprep.subr.bf16.mxu0 %v2430_v27  ;;  %1751 = vmatprep.subr.bf16.mxu1 %v2446_v41 }
 0x16a   :  { %1721 = vmatpush1.bf16.msra.mxu0 %v2439_v39  ;;  %1753 = vmatpush1.bf16.msra.mxu1 %v2450_v47 }
 0x16b   :  { %1755 = vmatprep.subr.bf16.mxu0 %v2358_v4  ;;  %1787 = vmatprep.subr.bf16.mxu1 %v2371_v22 }
 0x220   :  { %v352_v50 = vpop.f32.mrb[2].mxu0  ;;  %v423_v51 = vpop.f32.mrb[2].mxu1 }
 0x221   :  { %v428_v53 = vadd.f32 %v352_v50, %v282_v44  ;;  %v354_v54 = vpop.f32.mrb[3].mxu0  ;;  %v425_v56 = vpop.f32.mrb[3].mxu1  ;;  %v430_v5 = vadd.f32 %v423_v51, %v284_v2  ;;  %v458_v44 = vld [vmem:[#allocation2 + $0x48] sm:$0xff] }
 0x222   :  { %v429_v57 = vadd.f32 %v354_v54, %v283_v49  ;;  %v431_v63 = vadd.f32 %v425_v56, %v285_v61 }
 0x223   :  { %v1541_v59 = vmul.f32 -1.442695, %v428_v53 }
 0x224   :  { %v1542_v60 = vmul.f32 -1.442695, %v429_v57  ;;  %v1543_v3 = vmul.f32 -1.442695, %v431_v63  ;;  %v459_v63 = vld [vmem:[#allocation2 + $0x50] sm:$0xff] }
 0x225   :  { %2097 = vpow2.f32 %v1541_v59 }
 0x226   :  { %2099 = vpow2.f32 %v1542_v60  ;;  %v460_v60 = vld [vmem:[#allocation2 + $0x58] sm:$0xff] }
 0x227   :  { %2101 = vpow2.f32 %v1543_v3 }
 0x228   :  { %2103 = vtanh.f32 %v430_v5 }
 0x22f   :  { %v2098_v6 = vpop.eup %2097 }
 0x230   :  { %v2100_v11 = vpop.eup %2099  ;;  %v435_v12 = vadd.f32 1.0, %v2098_v6 }
 0x231   :  { %v441_v13 = vadd.f32 1.0, %v2100_v11  ;;  %v2102_v16 = vpop.eup %2101 }
 0x232   :  { %2105 = vrcp.f32 %v435_v12  ;;  %v2104_v19 = vpop.eup %2103  ;;  %v448_v28 = vadd.f32 1.0, %v2102_v16 }
 0x233   :  { %2107 = vrcp.f32 %v441_v13 }
 0x234   :  { %2109 = vrcp.f32 %v448_v28 }
 0x23c   :  { %v2106_v20 = vpop.eup %2105 }
 0x23d   :  { %v2108_v21 = vpop.eup %2107  ;;  %v452_v23 = vmul.f32 %v2106_v20, %v2104_v19 }
 0x23e   :  { %v451_v29 = vmul.f32 %v2108_v21, %v2492_v35  ;;  %v2110_v36 = vpop.eup %2109  ;;  %v457_v35 = vld [vmem:[#allocation2 + $0x40] sm:$0xff] }
 0x240   :  { %v2530_v34 = vadd.f32 %v452_v23, %v451_v29 }
 0x242   :  { %2111 = vtanh.f32 %v2530_v34 }
 0x24c   :  { %v2112_v38 = vpop.eup %2111 }
 0x24d   :  { %v455_v43 = vmul.f32 %v2112_v38, %v2110_v36 }
 0x24f   :  { %526 = vmatmul.mubr.f32.vlgmr.msra.gmra.mrb[4].mxu0 %v455_v43  ;;  %597 = vmatmul.mubr.f32.vlgmr.msra.gmra.mrb[4].mxu1 %v455_v43 }
 0x250   :  { %1757 = vmatpush1.bf16.msra.mxu0 %v2360_v8  ;;  %1789 = vmatpush1.bf16.msra.mxu1 %v2373_v25 }
 0x251   :  { %1759 = vmatprep.subr.bf16.mxu0 %v2362_v9  ;;  %1791 = vmatprep.subr.bf16.mxu1 %v2383_v33 }
 0x252   :  { %700 = vmatprep.mubr.f32.mxu0 %v2309_v0  ;;  %771 = vmatprep.mubr.f32.mxu1 %v2309_v0 }
 0x254   :  { %1761 = vmatpush1.bf16.msra.mxu0 %v2366_v14  ;;  %1793 = vmatpush1.bf16.msra.mxu1 %v2385_v37 }
 0x255   :  { %1763 = vmatprep.subr.bf16.mxu0 %v2369_v17  ;;  %1795 = vmatprep.subr.bf16.mxu1 %v2391_v45 }
 0x258   :  { %1765 = vmatpush1.bf16.msra.mxu0 %v2376_v26  ;;  %1797 = vmatpush1.bf16.msra.mxu1 %v2397_v48 }
 0x259   :  { %1767 = vmatprep.subr.bf16.mxu0 %v2380_v30  ;;  %1799 = vmatprep.subr.bf16.mxu1 %v2400_v52 }
 0x25c   :  { %1769 = vmatpush1.bf16.msra.mxu0 %v2389_v42  ;;  %1801 = vmatpush1.bf16.msra.mxu1 %v2409_v62 }
 0x25d   :  { %1771 = vmatprep.subr.bf16.mxu0 %v2394_v46  ;;  %1803 = vmatprep.subr.bf16.mxu1 %v2412_v1 }
 0x260   :  { %1773 = vmatpush1.bf16.msra.mxu0 %v2403_v55  ;;  %1805 = vmatpush1.bf16.msra.mxu1 %v2421_v15 }
 0x261   :  { %1775 = vmatprep.subr.bf16.mxu0 %v2406_v58  ;;  %1807 = vmatprep.subr.bf16.mxu1 %v2424_v18 }
 0x264   :  { %1777 = vmatpush1.bf16.msra.mxu0 %v2415_v7  ;;  %1809 = vmatpush1.bf16.msra.mxu1 %v2433_v31 }
 0x265   :  { %1779 = vmatprep.subr.bf16.mxu0 %v2418_v10  ;;  %1811 = vmatprep.subr.bf16.mxu1 %v2436_v32 }
 0x268   :  { %1781 = vmatpush1.bf16.msra.mxu0 %v2427_v24  ;;  %1813 = vmatpush1.bf16.msra.mxu1 %v2443_v40 }
 0x269   :  { %1783 = vmatprep.subr.bf16.mxu0 %v2430_v27  ;;  %1815 = vmatprep.subr.bf16.mxu1 %v2446_v41 }
 0x26c   :  { %1785 = vmatpush1.bf16.msra.mxu0 %v2439_v39  ;;  %1817 = vmatpush1.bf16.msra.mxu1 %v2450_v47 }
 0x26d   :  { %1819 = vmatprep.subr.bf16.mxu0 %v2358_v4  ;;  %1851 = vmatprep.subr.bf16.mxu1 %v2371_v22 }
 0x322   :  { %v527_v49 = vpop.f32.mrb[4].mxu0  ;;  %v598_v50 = vpop.f32.mrb[4].mxu1 }
 0x323   :  { %v603_v51 = vadd.f32 %v527_v49, %v457_v35  ;;  %v529_v53 = vpop.f32.mrb[5].mxu0  ;;  %v600_v54 = vpop.f32.mrb[5].mxu1  ;;  %v605_v3 = vadd.f32 %v598_v50, %v459_v63  ;;  %v633_v35 = vld [vmem:[#allocation2 + $0x68] sm:$0xff] }
 0x324   :  { %v604_v56 = vadd.f32 %v529_v53, %v458_v44  ;;  %v606_v61 = vadd.f32 %v600_v54, %v460_v60 }
 0x325   :  { %v1544_v57 = vmul.f32 -1.442695, %v603_v51 }
 0x326   :  { %v1545_v59 = vmul.f32 -1.442695, %v604_v56  ;;  %v1546_v2 = vmul.f32 -1.442695, %v606_v61  ;;  %v634_v61 = vld [vmem:[#allocation2 + $0x70] sm:$0xff] }
 0x327   :  { %2113 = vpow2.f32 %v1544_v57 }
 0x328   :  { %2115 = vpow2.f32 %v1545_v59  ;;  %v635_v59 = vld [vmem:[#allocation2 + $0x78] sm:$0xff] }
 0x329   :  { %2117 = vpow2.f32 %v1546_v2 }
 0x32a   :  { %2119 = vtanh.f32 %v605_v3 }
 0x331   :  { %v2114_v5 = vpop.eup %2113 }
 0x332   :  { %v2116_v6 = vpop.eup %2115  ;;  %v610_v11 = vadd.f32 1.0, %v2114_v5 }
 0x333   :  { %v616_v12 = vadd.f32 1.0, %v2116_v6  ;;  %v2118_v13 = vpop.eup %2117 }
 0x334   :  { %2121 = vrcp.f32 %v610_v11  ;;  %v2120_v16 = vpop.eup %2119  ;;  %v623_v23 = vadd.f32 1.0, %v2118_v13 }
 0x335   :  { %2123 = vrcp.f32 %v616_v12 }
 0x336   :  { %2125 = vrcp.f32 %v623_v23 }
 0x33e   :  { %v2122_v19 = vpop.eup %2121 }
 0x33f   :  { %v2124_v20 = vpop.eup %2123  ;;  %v627_v21 = vmul.f32 %v2122_v19, %v2120_v16 }
 0x340   :  { %v626_v28 = vmul.f32 %v2124_v20, %v2530_v34  ;;  %v2126_v36 = vpop.eup %2125  ;;  %v632_v34 = vld [vmem:[#allocation2 + $0x60] sm:$0xff] }
 0x342   :  { %v2568_v29 = vadd.f32 %v627_v21, %v626_v28 }
 0x344   :  { %2127 = vtanh.f32 %v2568_v29 }
 0x34e   :  { %v2128_v38 = vpop.eup %2127 }
 0x34f   :  { %v630_v43 = vmul.f32 %v2128_v38, %v2126_v36 }
 0x351   :  { %701 = vmatmul.mubr.f32.vlgmr.msra.gmra.mrb[6].mxu0 %v630_v43  ;;  %772 = vmatmul.mubr.f32.vlgmr.msra.gmra.mrb[6].mxu1 %v630_v43 }
 0x352   :  { %1821 = vmatpush1.bf16.msra.mxu0 %v2360_v8  ;;  %1853 = vmatpush1.bf16.msra.mxu1 %v2373_v25 }
 0x353   :  { %1823 = vmatprep.subr.bf16.mxu0 %v2362_v9  ;;  %1855 = vmatprep.subr.bf16.mxu1 %v2383_v33 }
 0x354   :  { %875 = vmatprep.mubr.f32.mxu0 %v2309_v0  ;;  %946 = vmatprep.mubr.f32.mxu1 %v2309_v0 }
 0x356   :  { %1825 = vmatpush1.bf16.msra.mxu0 %v2366_v14  ;;  %1857 = vmatpush1.bf16.msra.mxu1 %v2385_v37 }
 0x357   :  { %1827 = vmatprep.subr.bf16.mxu0 %v2369_v17  ;;  %1859 = vmatprep.subr.bf16.mxu1 %v2391_v45 }
 0x35a   :  { %1829 = vmatpush1.bf16.msra.mxu0 %v2376_v26  ;;  %1861 = vmatpush1.bf16.msra.mxu1 %v2397_v48 }
 0x35b   :  { %1831 = vmatprep.subr.bf16.mxu0 %v2380_v30  ;;  %1863 = vmatprep.subr.bf16.mxu1 %v2400_v52 }
 0x35e   :  { %1833 = vmatpush1.bf16.msra.mxu0 %v2389_v42  ;;  %1865 = vmatpush1.bf16.msra.mxu1 %v2409_v62 }
 0x35f   :  { %1835 = vmatprep.subr.bf16.mxu0 %v2394_v46  ;;  %1867 = vmatprep.subr.bf16.mxu1 %v2412_v1 }
 0x362   :  { %1837 = vmatpush1.bf16.msra.mxu0 %v2403_v55  ;;  %1869 = vmatpush1.bf16.msra.mxu1 %v2421_v15 }
 0x363   :  { %1839 = vmatprep.subr.bf16.mxu0 %v2406_v58  ;;  %1871 = vmatprep.subr.bf16.mxu1 %v2424_v18 }
 0x366   :  { %1841 = vmatpush1.bf16.msra.mxu0 %v2415_v7  ;;  %1873 = vmatpush1.bf16.msra.mxu1 %v2433_v31 }
 0x367   :  { %1843 = vmatprep.subr.bf16.mxu0 %v2418_v10  ;;  %1875 = vmatprep.subr.bf16.mxu1 %v2436_v32 }
 0x36a   :  { %1845 = vmatpush1.bf16.msra.mxu0 %v2427_v24  ;;  %1877 = vmatpush1.bf16.msra.mxu1 %v2443_v40 }
 0x36b   :  { %1847 = vmatprep.subr.bf16.mxu0 %v2430_v27  ;;  %1879 = vmatprep.subr.bf16.mxu1 %v2446_v41 }
 0x36e   :  { %1849 = vmatpush1.bf16.msra.mxu0 %v2439_v39  ;;  %1881 = vmatpush1.bf16.msra.mxu1 %v2450_v47 }
 0x36f   :  { %1883 = vmatprep.subr.bf16.mxu0 %v2358_v4  ;;  %1915 = vmatprep.subr.bf16.mxu1 %v2371_v22 }
 0x424   :  { %v702_v44 = vpop.f32.mrb[6].mxu0  ;;  %v773_v49 = vpop.f32.mrb[6].mxu1 }
 0x425   :  { %v778_v50 = vadd.f32 %v702_v44, %v632_v34  ;;  %v704_v51 = vpop.f32.mrb[7].mxu0  ;;  %v775_v53 = vpop.f32.mrb[7].mxu1  ;;  %v780_v2 = vadd.f32 %v773_v49, %v634_v61  ;;  %v808_v34 = vld [vmem:[#allocation2 + $0x88] sm:$0xff] }
 0x426   :  { %v779_v54 = vadd.f32 %v704_v51, %v633_v35  ;;  %v781_v60 = vadd.f32 %v775_v53, %v635_v59 }
 0x427   :  { %v1547_v56 = vmul.f32 -1.442695, %v778_v50 }
 0x428   :  { %v1548_v57 = vmul.f32 -1.442695, %v779_v54  ;;  %v1549_v63 = vmul.f32 -1.442695, %v781_v60  ;;  %v809_v60 = vld [vmem:[#allocation2 + $0x90] sm:$0xff] }
 0x429   :  { %2129 = vpow2.f32 %v1547_v56 }
 0x42a   :  { %2131 = vpow2.f32 %v1548_v57  ;;  %v810_v57 = vld [vmem:[#allocation2 + $0x98] sm:$0xff] }
 0x42b   :  { %2133 = vpow2.f32 %v1549_v63 }
 0x42c   :  { %2135 = vtanh.f32 %v780_v2 }
 0x433   :  { %v2130_v3 = vpop.eup %2129 }
 0x434   :  { %v2132_v5 = vpop.eup %2131  ;;  %v785_v6 = vadd.f32 1.0, %v2130_v3 }
 0x435   :  { %v791_v11 = vadd.f32 1.0, %v2132_v5  ;;  %v2134_v12 = vpop.eup %2133 }
 0x436   :  { %2137 = vrcp.f32 %v785_v6  ;;  %v2136_v13 = vpop.eup %2135  ;;  %v798_v21 = vadd.f32 1.0, %v2134_v12 }
 0x437   :  { %2139 = vrcp.f32 %v791_v11 }
 0x438   :  { %2141 = vrcp.f32 %v798_v21 }
 0x440   :  { %v2138_v16 = vpop.eup %2137 }
 0x441   :  { %v2140_v19 = vpop.eup %2139  ;;  %v802_v20 = vmul.f32 %v2138_v16, %v2136_v13 }
 0x442   :  { %v801_v23 = vmul.f32 %v2140_v19, %v2568_v29  ;;  %v2142_v36 = vpop.eup %2141  ;;  %v807_v29 = vld [vmem:[#allocation2 + $0x80] sm:$0xff] }
 0x444   :  { %v2606_v28 = vadd.f32 %v802_v20, %v801_v23 }
 0x446   :  { %2143 = vtanh.f32 %v2606_v28 }
 0x450   :  { %v2144_v38 = vpop.eup %2143 }
 0x451   :  { %v805_v43 = vmul.f32 %v2144_v38, %v2142_v36 }
 0x453   :  { %876 = vmatmul.mubr.f32.vlgmr.msra.gmra.mrb[8].mxu0 %v805_v43  ;;  %947 = vmatmul.mubr.f32.vlgmr.msra.gmra.mrb[8].mxu1 %v805_v43 }
 0x454   :  { %1885 = vmatpush1.bf16.msra.mxu0 %v2360_v8  ;;  %1917 = vmatpush1.bf16.msra.mxu1 %v2373_v25 }
 0x455   :  { %1887 = vmatprep.subr.bf16.mxu0 %v2362_v9  ;;  %1919 = vmatprep.subr.bf16.mxu1 %v2383_v33 }
 0x456   :  { %1050 = vmatprep.mubr.f32.mxu0 %v2309_v0  ;;  %1121 = vmatprep.mubr.f32.mxu1 %v2309_v0 }
 0x458   :  { %1889 = vmatpush1.bf16.msra.mxu0 %v2366_v14  ;;  %1921 = vmatpush1.bf16.msra.mxu1 %v2385_v37 }
 0x459   :  { %1891 = vmatprep.subr.bf16.mxu0 %v2369_v17  ;;  %1923 = vmatprep.subr.bf16.mxu1 %v2391_v45 }
 0x45c   :  { %1893 = vmatpush1.bf16.msra.mxu0 %v2376_v26  ;;  %1925 = vmatpush1.bf16.msra.mxu1 %v2397_v48 }
 0x45d   :  { %1895 = vmatprep.subr.bf16.mxu0 %v2380_v30  ;;  %1927 = vmatprep.subr.bf16.mxu1 %v2400_v52 }
 0x460   :  { %1897 = vmatpush1.bf16.msra.mxu0 %v2389_v42  ;;  %1929 = vmatpush1.bf16.msra.mxu1 %v2409_v62 }
 0x461   :  { %1899 = vmatprep.subr.bf16.mxu0 %v2394_v46  ;;  %1931 = vmatprep.subr.bf16.mxu1 %v2412_v1 }
 0x464   :  { %1901 = vmatpush1.bf16.msra.mxu0 %v2403_v55  ;;  %1933 = vmatpush1.bf16.msra.mxu1 %v2421_v15 }
 0x465   :  { %1903 = vmatprep.subr.bf16.mxu0 %v2406_v58  ;;  %1935 = vmatprep.subr.bf16.mxu1 %v2424_v18 }
 0x468   :  { %1905 = vmatpush1.bf16.msra.mxu0 %v2415_v7  ;;  %1937 = vmatpush1.bf16.msra.mxu1 %v2433_v31 }
 0x469   :  { %1907 = vmatprep.subr.bf16.mxu0 %v2418_v10  ;;  %1939 = vmatprep.subr.bf16.mxu1 %v2436_v32 }
 0x46c   :  { %1909 = vmatpush1.bf16.msra.mxu0 %v2427_v24  ;;  %1941 = vmatpush1.bf16.msra.mxu1 %v2443_v40 }
 0x46d   :  { %1911 = vmatprep.subr.bf16.mxu0 %v2430_v27  ;;  %1943 = vmatprep.subr.bf16.mxu1 %v2446_v41 }
 0x470   :  { %1913 = vmatpush1.bf16.msra.mxu0 %v2439_v39  ;;  %1945 = vmatpush1.bf16.msra.mxu1 %v2450_v47 }
 0x471   :  { %1947 = vmatprep.subr.bf16.mxu0 %v2358_v4  ;;  %1979 = vmatprep.subr.bf16.mxu1 %v2371_v22 }
 0x526   :  { %v877_v35 = vpop.f32.mrb[8].mxu0  ;;  %v948_v44 = vpop.f32.mrb[8].mxu1 }
 0x527   :  { %v953_v49 = vadd.f32 %v877_v35, %v807_v29  ;;  %v879_v50 = vpop.f32.mrb[9].mxu0  ;;  %v950_v51 = vpop.f32.mrb[9].mxu1  ;;  %v955_v63 = vadd.f32 %v948_v44, %v809_v60  ;;  %v983_v29 = vld [vmem:[#allocation2 + $0xa8] sm:$0xff] }
 0x528   :  { %v954_v53 = vadd.f32 %v879_v50, %v808_v34  ;;  %v956_v59 = vadd.f32 %v950_v51, %v810_v57 }
 0x529   :  { %v1550_v54 = vmul.f32 -1.442695, %v953_v49 }
 0x52a   :  { %v1551_v56 = vmul.f32 -1.442695, %v954_v53  ;;  %v1552_v61 = vmul.f32 -1.442695, %v956_v59  ;;  %v984_v59 = vld [vmem:[#allocation2 + $0xb0] sm:$0xff] }
 0x52b   :  { %2145 = vpow2.f32 %v1550_v54 }
 0x52c   :  { %2147 = vpow2.f32 %v1551_v56  ;;  %v985_v56 = vld [vmem:[#allocation2 + $0xb8] sm:$0xff] }
 0x52d   :  { %2149 = vpow2.f32 %v1552_v61 }
 0x52e   :  { %2151 = vtanh.f32 %v955_v63 }
 0x535   :  { %v2146_v2 = vpop.eup %2145 }
 0x536   :  { %v2148_v3 = vpop.eup %2147  ;;  %v960_v5 = vadd.f32 1.0, %v2146_v2 }
 0x537   :  { %v966_v6 = vadd.f32 1.0, %v2148_v3  ;;  %v2150_v11 = vpop.eup %2149 }
 0x538   :  { %2153 = vrcp.f32 %v960_v5  ;;  %v2152_v12 = vpop.eup %2151  ;;  %v973_v20 = vadd.f32 1.0, %v2150_v11 }
 0x539   :  { %2155 = vrcp.f32 %v966_v6 }
 0x53a   :  { %2157 = vrcp.f32 %v973_v20 }
 0x542   :  { %v2154_v13 = vpop.eup %2153 }
 0x543   :  { %v2156_v16 = vpop.eup %2155  ;;  %v977_v19 = vmul.f32 %v2154_v13, %v2152_v12 }
 0x544   :  { %v976_v21 = vmul.f32 %v2156_v16, %v2606_v28  ;;  %v2158_v36 = vpop.eup %2157  ;;  %v982_v28 = vld [vmem:[#allocation2 + $0xa0] sm:$0xff] }
 0x546   :  { %v2644_v23 = vadd.f32 %v977_v19, %v976_v21 }
 0x548   :  { %2159 = vtanh.f32 %v2644_v23 }
 0x552   :  { %v2160_v38 = vpop.eup %2159 }
 0x553   :  { %v980_v43 = vmul.f32 %v2160_v38, %v2158_v36 }
 0x555   :  { %1051 = vmatmul.mubr.f32.vlgmr.msra.gmra.mrb[10].mxu0 %v980_v43  ;;  %1122 = vmatmul.mubr.f32.vlgmr.msra.gmra.mrb[10].mxu1 %v980_v43 }
 0x556   :  { %1949 = vmatpush1.bf16.msra.mxu0 %v2360_v8  ;;  %1981 = vmatpush1.bf16.msra.mxu1 %v2373_v25 }
 0x557   :  { %1951 = vmatprep.subr.bf16.mxu0 %v2362_v9  ;;  %1983 = vmatprep.subr.bf16.mxu1 %v2383_v33 }
 0x558   :  { %1225 = vmatprep.mubr.f32.mxu0 %v2309_v0  ;;  %1296 = vmatprep.mubr.f32.mxu1 %v2309_v0 }
 0x55a   :  { %1953 = vmatpush1.bf16.msra.mxu0 %v2366_v14  ;;  %1985 = vmatpush1.bf16.msra.mxu1 %v2385_v37 }
 0x55b   :  { %1955 = vmatprep.subr.bf16.mxu0 %v2369_v17  ;;  %1987 = vmatprep.subr.bf16.mxu1 %v2391_v45 }
 0x55e   :  { %1957 = vmatpush1.bf16.msra.mxu0 %v2376_v26  ;;  %1989 = vmatpush1.bf16.msra.mxu1 %v2397_v48 }
 0x55f   :  { %1959 = vmatprep.subr.bf16.mxu0 %v2380_v30  ;;  %1991 = vmatprep.subr.bf16.mxu1 %v2400_v52 }
 0x562   :  { %1961 = vmatpush1.bf16.msra.mxu0 %v2389_v42  ;;  %1993 = vmatpush1.bf16.msra.mxu1 %v2409_v62 }
 0x563   :  { %1963 = vmatprep.subr.bf16.mxu0 %v2394_v46  ;;  %1995 = vmatprep.subr.bf16.mxu1 %v2412_v1 }
 0x566   :  { %1965 = vmatpush1.bf16.msra.mxu0 %v2403_v55  ;;  %1997 = vmatpush1.bf16.msra.mxu1 %v2421_v15 }
 0x567   :  { %1967 = vmatprep.subr.bf16.mxu0 %v2406_v58  ;;  %1999 = vmatprep.subr.bf16.mxu1 %v2424_v18 }
 0x56a   :  { %1969 = vmatpush1.bf16.msra.mxu0 %v2415_v7  ;;  %2001 = vmatpush1.bf16.msra.mxu1 %v2433_v31 }
 0x56b   :  { %1971 = vmatprep.subr.bf16.mxu0 %v2418_v10  ;;  %2003 = vmatprep.subr.bf16.mxu1 %v2436_v32 }
 0x56e   :  { %1973 = vmatpush1.bf16.msra.mxu0 %v2427_v24  ;;  %2005 = vmatpush1.bf16.msra.mxu1 %v2443_v40 }
 0x56f   :  { %1975 = vmatprep.subr.bf16.mxu0 %v2430_v27  ;;  %2007 = vmatprep.subr.bf16.mxu1 %v2446_v41 }
 0x572   :  { %1977 = vmatpush1.bf16.msra.mxu0 %v2439_v39  ;;  %2009 = vmatpush1.bf16.msra.mxu1 %v2450_v47 }
 0x573   :  { %2011 = vmatprep.subr.bf16.mxu0 %v2358_v4  ;;  %2043 = vmatprep.subr.bf16.mxu1 %v2371_v22 }
 0x628   :  { %v1052_v34 = vpop.f32.mrb[10].mxu0  ;;  %v1123_v35 = vpop.f32.mrb[10].mxu1 }
 0x629   :  { %v1128_v44 = vadd.f32 %v1052_v34, %v982_v28  ;;  %v1054_v49 = vpop.f32.mrb[11].mxu0  ;;  %v1125_v50 = vpop.f32.mrb[11].mxu1  ;;  %v1130_v61 = vadd.f32 %v1123_v35, %v984_v59 }
 0x62a   :  { %v1129_v51 = vadd.f32 %v1054_v49, %v983_v29  ;;  %v1131_v57 = vadd.f32 %v1125_v50, %v985_v56  ;;  %v1335_v50 = vld [vmem:[#allocation2 + $0xf8] sm:$0xff] }
 0x62b   :  { %v1553_v53 = vmul.f32 -1.442695, %v1128_v44 }
 0x62c   :  { %v1554_v54 = vmul.f32 -1.442695, %v1129_v51  ;;  %v1555_v60 = vmul.f32 -1.442695, %v1131_v57 }
 0x62d   :  { %2161 = vpow2.f32 %v1553_v53  ;;  %v1334_v53 = vld [vmem:[#allocation2 + $0xf0] sm:$0xff] }
 0x62e   :  { %2163 = vpow2.f32 %v1554_v54 }
 0x62f   :  { %2165 = vpow2.f32 %v1555_v60 }
 0x630   :  { %2167 = vtanh.f32 %v1130_v61 }
 0x637   :  { %v2162_v4 = vpop.eup %2161 }
 0x638   :  { %v2164_v63 = vpop.eup %2163  ;;  %v1135_v22 = vadd.f32 1.0, %v2162_v4 }
 0x639   :  { %v1141_v2 = vadd.f32 1.0, %v2164_v63  ;;  %v2166_v3 = vpop.eup %2165 }
 0x63a   :  { %2169 = vrcp.f32 %v1135_v22  ;;  %v2168_v5 = vpop.eup %2167  ;;  %v1148_v13 = vadd.f32 1.0, %v2166_v3 }
 0x63b   :  { %2171 = vrcp.f32 %v1141_v2 }
 0x63c   :  { %2173 = vrcp.f32 %v1148_v13 }
 0x644   :  { %v2170_v6 = vpop.eup %2169 }
 0x645   :  { %v2172_v11 = vpop.eup %2171  ;;  %v1152_v12 = vmul.f32 %v2170_v6, %v2168_v5 }
 0x646   :  { %v1151_v16 = vmul.f32 %v2172_v11, %v2644_v23  ;;  %v2174_v20 = vpop.eup %2173  ;;  %v1333_v23 = vld [vmem:[#allocation2 + $0xe8] sm:$0xff] }
 0x648   :  { %v2682_v19 = vadd.f32 %v1152_v12, %v1151_v16 }
 0x64a   :  { %2175 = vtanh.f32 %v2682_v19 }
 0x654   :  { %v2176_v21 = vpop.eup %2175 }
 0x655   :  { %v1155_v36 = vmul.f32 %v2176_v21, %v2174_v20 }
 0x657   :  { %1226 = vmatmul.mubr.f32.vlgmr.msra.gmra.mrb[12].mxu0 %v1155_v36  ;;  %1297 = vmatmul.mubr.f32.vlgmr.msra.gmra.mrb[12].mxu1 %v1155_v36 }
 0x658   :  { %2013 = vmatpush1.bf16.msra.mxu0 %v2360_v8  ;;  %2045 = vmatpush1.bf16.msra.mxu1 %v2373_v25  ;;  %v1158_v8 = vld [vmem:[#allocation2 + $0xc8] sm:$0xff] }
 0x659   :  { %2015 = vmatprep.subr.bf16.mxu0 %v2362_v9  ;;  %2047 = vmatprep.subr.bf16.mxu1 %v2383_v33 }
 0x65a   :  { %1400 = vmatprep.mubr.f32.mxu0 %v2309_v0  ;;  %1471 = vmatprep.mubr.f32.mxu1 %v2309_v0  ;;  %v1157_v0 = vld [vmem:[#allocation2 + $0xc0] sm:$0xff] }
 0x65c   :  { %2017 = vmatpush1.bf16.msra.mxu0 %v2366_v14  ;;  %2049 = vmatpush1.bf16.msra.mxu1 %v2385_v37 }
 0x65d   :  { %2019 = vmatprep.subr.bf16.mxu0 %v2369_v17  ;;  %2051 = vmatprep.subr.bf16.mxu1 %v2391_v45 }
 0x660   :  { %2021 = vmatpush1.bf16.msra.mxu0 %v2376_v26  ;;  %2053 = vmatpush1.bf16.msra.mxu1 %v2397_v48 }
 0x661   :  { %2023 = vmatprep.subr.bf16.mxu0 %v2380_v30  ;;  %2055 = vmatprep.subr.bf16.mxu1 %v2400_v52 }
 0x664   :  { %2025 = vmatpush1.bf16.msra.mxu0 %v2389_v42  ;;  %2057 = vmatpush1.bf16.msra.mxu1 %v2409_v62  ;;  %v1160_v42 = vld [vmem:[#allocation2 + $0xd8] sm:$0xff] }
 0x665   :  { %2027 = vmatprep.subr.bf16.mxu0 %v2394_v46  ;;  %2059 = vmatprep.subr.bf16.mxu1 %v2412_v1  ;;  %v1159_v46 = vld [vmem:[#allocation2 + $0xd0] sm:$0xff] }
 0x668   :  { %2029 = vmatpush1.bf16.msra.mxu0 %v2403_v55  ;;  %2061 = vmatpush1.bf16.msra.mxu1 %v2421_v15 }
 0x669   :  { %2031 = vmatprep.subr.bf16.mxu0 %v2406_v58  ;;  %2063 = vmatprep.subr.bf16.mxu1 %v2424_v18 }
 0x66c   :  { %2033 = vmatpush1.bf16.msra.mxu0 %v2415_v7  ;;  %2065 = vmatpush1.bf16.msra.mxu1 %v2433_v31 }
 0x66d   :  { %2035 = vmatprep.subr.bf16.mxu0 %v2418_v10  ;;  %2067 = vmatprep.subr.bf16.mxu1 %v2436_v32 }
 0x670   :  { %2037 = vmatpush1.bf16.msra.mxu0 %v2427_v24  ;;  %2069 = vmatpush1.bf16.msra.mxu1 %v2443_v40 }
 0x671   :  { %2039 = vmatprep.subr.bf16.mxu0 %v2430_v27  ;;  %2071 = vmatprep.subr.bf16.mxu1 %v2446_v41 }
 0x674   :  { %2041 = vmatpush1.bf16.msra.mxu0 %v2439_v39  ;;  %2073 = vmatpush1.bf16.msra.mxu1 %v2450_v47  ;;  %v1332_v47 = vld [vmem:[#allocation2 + $0xe0] sm:$0xff] }
 0x72a   :  { %v1227_v9 = vpop.f32.mrb[12].mxu0  ;;  %v1298_v14 = vpop.f32.mrb[12].mxu1 }
 0x72b   :  { %v1303_v17 = vadd.f32 %v1227_v9, %v1157_v0  ;;  %v1229_v25 = vpop.f32.mrb[13].mxu0  ;;  %v1300_v26 = vpop.f32.mrb[13].mxu1  ;;  %v1305_v52 = vadd.f32 %v1298_v14, %v1159_v46 }
 0x72c   :  { %v1304_v30 = vadd.f32 %v1229_v25, %v1158_v8  ;;  %v1306_v45 = vadd.f32 %v1300_v26, %v1160_v42 }
 0x72d   :  { %v1556_v33 = vmul.f32 -1.442695, %v1303_v17 }
 0x72e   :  { %v1557_v37 = vmul.f32 -1.442695, %v1304_v30  ;;  %v1558_v48 = vmul.f32 -1.442695, %v1306_v45 }
 0x72f   :  { %2177 = vpow2.f32 %v1556_v33 }
 0x730   :  { %2179 = vpow2.f32 %v1557_v37 }
 0x731   :  { %2181 = vpow2.f32 %v1558_v48 }
 0x732   :  { %2183 = vtanh.f32 %v1305_v52 }
 0x739   :  { %v2178_v55 = vpop.eup %2177 }
 0x73a   :  { %v2180_v58 = vpop.eup %2179  ;;  %v1310_v62 = vadd.f32 1.0, %v2178_v55 }
 0x73b   :  { %v1316_v1 = vadd.f32 1.0, %v2180_v58  ;;  %v2182_v7 = vpop.eup %2181 }
 0x73c   :  { %2185 = vrcp.f32 %v1310_v62  ;;  %v2184_v10 = vpop.eup %2183  ;;  %v1323_v27 = vadd.f32 1.0, %v2182_v7 }
 0x73d   :  { %2187 = vrcp.f32 %v1316_v1 }
 0x73e   :  { %2189 = vrcp.f32 %v1323_v27 }
 0x746   :  { %v2186_v15 = vpop.eup %2185 }
 0x747   :  { %v2188_v18 = vpop.eup %2187  ;;  %v1327_v24 = vmul.f32 %v2186_v15, %v2184_v10 }
 0x748   :  { %v1326_v31 = vmul.f32 %v2188_v18, %v2682_v19  ;;  %v2190_v39 = vpop.eup %2189 }
 0x74a   :  { %v1328_v32 = vadd.f32 %v1327_v24, %v1326_v31 }
 0x74c   :  { %2191 = vtanh.f32 %v1328_v32 }
 0x756   :  { %v2192_v40 = vpop.eup %2191 }
 0x757   :  { %v1330_v41 = vmul.f32 %v2192_v40, %v2190_v39 }
 0x759   :  { %1401 = vmatmul.mubr.f32.vlgmr.msra.gmra.mrb[14].mxu0 %v1330_v41  ;;  %1472 = vmatmul.mubr.f32.vlgmr.msra.gmra.mrb[14].mxu1 %v1330_v41 }
 0x82c   :  { %v1402_v38 = vpop.f32.mrb[14].mxu0  ;;  %v1473_v43 = vpop.f32.mrb[14].mxu1 }
 0x82d   :  { %v1478_v28 = vadd.f32 %v1402_v38, %v1332_v47  ;;  %v1404_v29 = vpop.f32.mrb[15].mxu0  ;;  %v1475_v34 = vpop.f32.mrb[15].mxu1  ;;  %v1480_v56 = vadd.f32 %v1473_v43, %v1334_v53 }
 0x82e   :  { %v1479_v35 = vadd.f32 %v1404_v29, %v1333_v23  ;;  %v1481_v51 = vadd.f32 %v1475_v34, %v1335_v50 }
 0x82f   :  { %v1559_v44 = vmul.f32 -1.442695, %v1478_v28 }
 0x830   :  { %v1560_v49 = vmul.f32 -1.442695, %v1479_v35  ;;  %v1561_v54 = vmul.f32 -1.442695, %v1481_v51 }
 0x831   :  { %2193 = vpow2.f32 %v1559_v44 }
 0x832   :  { %2195 = vpow2.f32 %v1560_v49 }
 0x833   :  { %2197 = vpow2.f32 %v1561_v54 }
 0x834   :  { %2199 = vtanh.f32 %v1480_v56 }
 0x83b   :  { %v2194_v57 = vpop.eup %2193 }
 0x83c   :  { %v2196_v59 = vpop.eup %2195  ;;  %v1485_v60 = vadd.f32 1.0, %v2194_v57 }
 0x83d   :  { %v1491_v61 = vadd.f32 1.0, %v2196_v59  ;;  %v2198_v4 = vpop.eup %2197 }
 0x83e   :  { %2201 = vrcp.f32 %v1485_v60  ;;  %v2200_v63 = vpop.eup %2199  ;;  %v1498_v5 = vadd.f32 1.0, %v2198_v4 }
 0x83f   :  { %2203 = vrcp.f32 %v1491_v61 }
 0x840   :  { %2205 = vrcp.f32 %v1498_v5 }
 0x848   :  { %v2202_v22 = vpop.eup %2201 }
 0x849   :  { %v2204_v2 = vpop.eup %2203  ;;  %v1502_v3 = vmul.f32 %v2202_v22, %v2200_v63 }
 0x84a   :  { %v1501_v6 = vmul.f32 %v2204_v2, %v1328_v32 }
 0x84c   :  { %v1503_v11 = vadd.f32 %v1502_v3, %v1501_v6 }
 0x84e   :  { %2207 = vtanh.f32 %v1503_v11  ;;  %1507 = vst [vmem:[#allocation8] sm:$0xff] %v1503_v11 }
 0x84f   :  { %2264 = shalt.err (!%p2261_p6)
}
 0x850   :  { %s2265_s14 = scalar_lea.hbm %s2745_s3, 128 }
 0x851   :  { %p2266_p7 = scmp.ne.s32.totalorder %s2745_s3, %s2265_s14  ;;  %p2269_p8 = scmp.lt.u32.totalorder %s2265_s14, %s2745_s3 }
 0x853   :  { %p2271_p9 = pnand %p2269_p8, %p2266_p7 }
 0x855   :  { %2274 = shalt.err (!%p2271_p9)
}
 0x856   :  { %1527 = dma.vmem_to_hbm [thread:$0]  %s1525_s10, 128, %s2745_s3, [#allocation9]   ;;  %v2206_v12 = vpop.eup %2205 }
 0x857   :  { %s2311_s21 = smov [#allocation7]  }
 0x858   :  { %s1514_s22 = sshll.u32 %s2311_s21, 4  ;;  %v2208_v13 = vpop.eup %2207  ;;  %s1515_s22 = int_to_ptr.vmem [resolvable:$true] %s1514_s22 }
 0x859   :  { %v1505_v16 = vmul.f32 %v2208_v13, %v2206_v12  ;;  %s2275_s23 = scalar_lea.vmem %s1515_s22, 128  ;;  %p2280_p11 = scmp.lt.s32.totalorder %s1515_s22, %s1515_s22 }
 0x85a   :  { %p2276_p10 = scmp.ne.s32.totalorder %s1515_s22, %s2275_s23  ;;  %p2281_p12 = scmp.lt.s32.totalorder %s2275_s23, %s2275_s23 }
 0x85b   :  { %1506 = vst [vmem:[#allocation7] sm:$0xff] %v1505_v16 }
 0x85c   :  { %p2282_p13 = por %p2281_p12, %p2280_p11 }
 0x85e   :  { %p2283_p0 = pnand %p2282_p13, %p2276_p10 }
 0x860   :  { %2286 = shalt.err (!%p2283_p0)
}
 0x861   :  { %s2287_s26 = scalar_lea.hbm %s2744_s2, 128 }
 0x862   :  { %p2288_p1 = scmp.ne.s32.totalorder %s2744_s2, %s2287_s26  ;;  %p2291_p2 = scmp.lt.u32.totalorder %s2287_s26, %s2744_s2 }
 0x864   :  { %p2293_p3 = pnand %p2291_p2, %p2288_p1 }
 0x866   :  { %2296 = shalt.err (!%p2293_p3)
}
 0x867   :  { %1517 = dma.vmem_to_hbm [thread:$0]  %s1515_s22, 128, %s2744_s2, [#allocation4]  }
 0x868   :  { %2301 = dma.done.wait [#allocation4], 128  }
 0x869   :  { %2302 = vsyncadd [#allocation4], 4294967168 }
 0x86a   :  { %2303 = dma.done.wait [#allocation9], 128  }
 0x86b   :  { %2304 = vsyncadd [#allocation9], 4294967168 }
 0x86c   :  { %1534 = vsyncpa [#allocation3], 1 }
 0x86d   :  { %1535 = vsyncpa [#allocation6], 1 }
 0x86e   :  { %1536 = vsyncpa [#allocation4], 1 }
 0x86f   :  { %1537 = vsyncpa [#allocation9], 1 }

</bundles_post_ra>
